<compile_context>
chip_gen: v6e
topology: v6e:2x2x1
jax: 0.10.0
libtpu: 0.0.40
codegen_flags: <defaults>
</compile_context>

<pallas_src>
import functools
import math

import jax
import jax.numpy as jnp
from jax.experimental import pallas as pl
from jax.experimental.pallas import tpu as pltpu


def _num_tensorcores():
    # v7x (and v4 megacore) expose 2 TensorCores that the "parallel" grid axis shards across;
    # v5e / v6e have a single TC, so extra grid steps there are pure serial overhead (~0.35us each).
    try:
        kind = jax.devices()[0].device_kind.lower()
    except Exception:
        return 1
    return 2 if ("v7" in kind or "v4" in kind) else 1


def _pick_batch_block(B, max_block=64):
    # Pack as many batch rows per grid step as is useful: one step on single-TC chips,
    # (at least) two "parallel" steps on dual-TC chips so both cores receive work.
    n_cores = _num_tensorcores()
    target = min(max_block, max(1, B // n_cores))
    for d in range(target, 0, -1):
        if B % d == 0:
            return d
    return 1


def _cross_attn_kernel(num_heads, bblk,
                       q_ref, kvf_ref,
                       wq_ref, bq_ref,
                       wkvf_ref, bkvf_ref,
                       wo_ref, bo_ref,
                       gamma_ref, beta_ref,
                       mask2_ref, mtail_ref,
                       o_ref):
    f32 = jnp.float32
    bf16 = jnp.bfloat16

    rows_q, E = q_ref.shape          # rows_q = bblk * Sq
    rows_kv = kvf_ref.shape[0]       # rows_kv = bblk * Skv
    Sq = rows_q // bblk
    Skv = rows_kv // bblk
    J = num_heads * Skv              # all (head, key) score columns

    q = q_ref[...]                   # (rows_q, E) f32 -- kept f32 for residual / LayerNorm
    qb = q.astype(bf16)

    # ---- projections: weights pre-transposed to (in, out), bf16 operands / f32 accumulation ----
    # Q projection (1/sqrt(hd) pre-folded into wq / bq in the wrapper).
    qp = jnp.dot(qb, wq_ref[...], preferred_element_type=f32) + bq_ref[...]            # (rows_q, E)
    # Fused kv_proj -> K/V in-projection: one matmul producing [K | V] lanes.
    kvp = jnp.dot(kvf_ref[...], wkvf_ref[...], preferred_element_type=f32) + bkvf_ref[...]  # (rows_kv, 2E)
    kvp_b = kvp.astype(bf16)

    # ---- head-batched attention via block-diagonal (head-masked) K / V ----
    # mask2 = [mask | mask] (J, 2E) bf16, mask[j, e] = (j // Skv == e // hd); precomputed host-side.
    kv3 = kvp_b.reshape(bblk, Skv, 2 * E)
    kv_rep = jnp.concatenate([kv3] * num_heads, axis=1)             # (bblk, J, 2E) sublane-tiled copy
    kv_m = kv_rep * mask2_ref[...][None]                            # single 64-lane bf16 mask multiply
    km = kv_m[..., :E]                                              # (bblk, J, E)
    # Augment V with the mask itself: the PV matmul then yields the numerator (lanes :E) AND the
    # per-head softmax denominator, already broadcast to that head's output lanes (lanes E:).
    vm_aug = jnp.concatenate([kv_m[..., E:], mtail_ref[...]], axis=-1)   # (bblk, J, 2E) bf16

    qp3 = qp.astype(bf16).reshape(bblk, Sq, E)
    # All heads' scores in ONE batched MXU contraction (contract over E).
    s = jnp.einsum("bqe,bje->bqj", qp3, km, preferred_element_type=f32)  # (bblk, Sq, J)

    # Shift-invariant softmax; the row-global max across heads is exact.  (A per-head max would be
    # slightly more underflow-robust; the denom clamp below keeps the result finite regardless.)
    m = jnp.max(s, axis=-1, keepdims=True)
    p = jnp.exp(s - m).astype(bf16)                                      # same p feeds num & denom

    o_aug = jnp.einsum("bqj,bjf->bqf", p, vm_aug, preferred_element_type=f32)  # (bblk, Sq, 2E)
    o2 = o_aug.reshape(rows_q, 2 * E)
    num = o2[:, :E]
    den = jnp.maximum(o2[:, E:], 1e-30)     # guard against a fully-underflowed head -> 0, never NaN
    attn = num * pl.reciprocal(den, approx=True)

    # ---- output projection + residual + LayerNorm (f32 elementwise) ----
    out = jnp.dot(attn.astype(bf16), wo_ref[...], preferred_element_type=f32) + bo_ref[...]
    res = q + out
    mean = jnp.mean(res, axis=-1, keepdims=True)
    cent = res - mean
    var = jnp.mean(cent * cent, axis=-1, keepdims=True)
    y = cent * jax.lax.rsqrt(var + 1e-5) * gamma_ref[...] + beta_ref[...]

    o_ref[...] = y.astype(o_ref.dtype)


def cross_attention_pallas(q_feat, kv_feat, params, num_heads):
    B, H, W, C = q_feat.shape
    Sq = H * W
    kv_feat = kv_feat.reshape(B, -1, kv_feat.shape[-1])
    Skv = kv_feat.shape[1]
    Dkv = kv_feat.shape[-1]

    assert C % num_heads == 0, "embed dim must divide num_heads"
    # TODO(synk): pad Sq / Skv to sublane multiples to support arbitrary shapes.
    assert Sq % 8 == 0 and Skv % 8 == 0
    hd = C // num_heads
    J = num_heads * Skv
    scale = 1.0 / math.sqrt(hd)

    (w_kv, b_kv, w_q, b_q, w_k, b_k, w_v, b_v, w_o, b_o, gamma, beta) = params

    wdt = jnp.bfloat16
    # Pre-transpose every weight to (in, out); fold 1/sqrt(hd) into the Q projection; pre-compose
    # kv_proj with the K/V in-projections into one (Dkv, 2C) matmul (composition done in f32).
    w_kv_in = jnp.concatenate([w_k.T, w_v.T], axis=1)                     # (C, 2C) f32
    w_kvf = (w_kv.T @ w_kv_in).astype(wdt)                                # (Dkv, 2C)
    b_kvf = (b_kv @ w_kv_in + jnp.concatenate([b_k, b_v])
             ).reshape(1, -1).astype(jnp.float32)                         # (1, 2C)
    w_q_t = (w_q.T * scale).astype(wdt)                                   # (C, C)
    b_q_r = (b_q * scale).reshape(1, -1).astype(jnp.float32)
    w_o_t = w_o.T.astype(wdt)                                             # (C, C)
    b_o_r = b_o.reshape(1, -1).astype(jnp.float32)
    gamma_r = gamma.reshape(1, -1).astype(jnp.float32)
    beta_r = beta.reshape(1, -1).astype(jnp.float32)

    bblk = _pick_batch_block(B)
    grid = (B // bblk,)

    # Block-diagonal head mask, precomputed host-side (VMEM-resident in the kernel).
    j_head = jnp.arange(J, dtype=jnp.int32)[:, None] // Skv
    e_head = jnp.arange(C, dtype=jnp.int32)[None, :] // hd
    mask = (j_head == e_head).astype(jnp.bfloat16)                        # (J, C)
    mask2 = jnp.concatenate([mask, mask], axis=1)                         # (J, 2C) for the [K|V] multiply
    mask_tail = jnp.tile(mask[None], (bblk, 1, 1))                        # (bblk, J, C) for the V augmentation

    # activations: bf16 matmul operands; q stays f32 (needed for residual / LayerNorm precision)
    q2 = q_feat.reshape(B * Sq, C).astype(jnp.float32)
    kv2 = kv_feat.reshape(B * Skv, Dkv).astype(jnp.bfloat16)

    def row_spec(rows, cols):
        return pl.BlockSpec((rows, cols), lambda i: (i, 0))

    def full_spec(arr):
        nd = arr.ndim
        return pl.BlockSpec(arr.shape, lambda i, nd=nd: (0,) * nd)

    out = pl.pallas_call(
        functools.partial(_cross_attn_kernel, num_heads, bblk),
        out_shape=jax.ShapeDtypeStruct((B * Sq, C), jnp.float32),
        grid_spec=pltpu.PrefetchScalarGridSpec(
            num_scalar_prefetch=0,
            grid=grid,
            in_specs=[
                row_spec(bblk * Sq, C),        # q rows
                row_spec(bblk * Skv, Dkv),     # kv rows
                full_spec(w_q_t), full_spec(b_q_r),
                full_spec(w_kvf), full_spec(b_kvf),
                full_spec(w_o_t), full_spec(b_o_r),
                full_spec(gamma_r), full_spec(beta_r),
                full_spec(mask2), full_spec(mask_tail),
            ],
            out_specs=row_spec(bblk * Sq, C),
        ),
        compiler_params=pltpu.CompilerParams(
            dimension_semantics=("parallel",),
            vmem_limit_bytes=32 * 1024 * 1024,
        ),
    )(q2, kv2, w_q_t, b_q_r, w_kvf, b_kvf, w_o_t, b_o_r,
      gamma_r, beta_r, mask2, mask_tail)

    return out.reshape(B, H, W, C)


def _reference(q_feat, kv_feat, params, num_heads):
    # pure-JAX f32 reference mirroring torch.nn.MultiheadAttention / LayerNorm semantics
    (w_kv, b_kv, w_q, b_q, w_k, b_k, w_v, b_v, w_o, b_o, gamma, beta) = params
    B, H, W, C = q_feat.shape
    q = q_feat.reshape(B, H * W, C)
    kv = kv_feat.reshape(B, -1, kv_feat.shape[-1]) @ w_kv.T + b_kv
    qp = q @ w_q.T + b_q
    kp = kv @ w_k.T + b_k
    vp = kv @ w_v.T + b_v
    hd = C // num_heads
    qh = qp.reshape(B, -1, num_heads, hd).transpose(0, 2, 1, 3)
    kh = kp.reshape(B, -1, num_heads, hd).transpose(0, 2, 1, 3)
    vh = vp.reshape(B, -1, num_heads, hd).transpose(0, 2, 1, 3)
    s = jnp.einsum("bhqd,bhkd->bhqk", qh, kh) / math.sqrt(hd)
    p = jax.nn.softmax(s, axis=-1)
    o = jnp.einsum("bhqk,bhkd->bhqd", p, vh).transpose(0, 2, 1, 3).reshape(B, -1, C)
    o = o @ w_o.T + b_o
    r = q + o
    mean = r.mean(-1, keepdims=True)
    var = ((r - mean) ** 2).mean(-1, keepdims=True)
    y = (r - mean) / jnp.sqrt(var + 1e-5) * gamma + beta
    return y.reshape(B, H, W, C)


def _make_params(keys, dim_q, dim_kv):
    s = 0.1
    return (
        jax.random.normal(keys[0], (dim_q, dim_kv), jnp.float32) * s,  # kv_proj.weight
        jax.random.normal(keys[1], (dim_q,), jnp.float32) * s,         # kv_proj.bias
        jax.random.normal(keys[2], (dim_q, dim_q), jnp.float32) * s,   # Wq (in_proj[:E])
        jax.random.normal(keys[3], (dim_q,), jnp.float32) * s,         # bq
        jax.random.normal(keys[4], (dim_q, dim_q), jnp.float32) * s,   # Wk
        jax.random.normal(keys[5], (dim_q,), jnp.float32) * s,         # bk
        jax.random.normal(keys[6], (dim_q, dim_q), jnp.float32) * s,   # Wv
        jax.random.normal(keys[7], (dim_q,), jnp.float32) * s,         # bv
        jax.random.normal(keys[8], (dim_q, dim_q), jnp.float32) * s,   # out_proj.weight
        jax.random.normal(keys[9], (dim_q,), jnp.float32) * s,         # out_proj.bias
        jnp.ones((dim_q,), jnp.float32),                               # LayerNorm.weight
        jnp.zeros((dim_q,), jnp.float32),                              # LayerNorm.bias
    )


if __name__ == "__main__":
    dim_q, dim_kv, num_heads = 32, 16, 8

    def run_case(key, B, Hs, Ws, Skv):
        ks = jax.random.split(key, 3)
        q_feat = jax.random.normal(ks[0], (B, Hs, Ws, dim_q), jnp.float32)
        kv_feat = jax.random.normal(ks[1], (B, Skv, dim_kv), jnp.float32)
        params = _make_params(jax.random.split(ks[2], 10), dim_q, dim_kv)

        out = jax.block_until_ready(
            cross_attention_pallas(q_feat, kv_feat, params, num_heads))
        ref = _reference(q_feat, kv_feat, params, num_heads)
        assert out.shape == (B, Hs, Ws, dim_q)
        # bf16 matmul operands + approx reciprocal -> slightly looser tolerance than pure f32
        assert jnp.allclose(out, ref, rtol=2e-2, atol=2e-2), (
            f"mismatch vs reference: max abs err {jnp.max(jnp.abs(out - ref))}")

    root = jax.random.PRNGKey(0)
    k1, k2 = jax.random.split(root)
    run_case(k1, B=2, Hs=8, Ws=8, Skv=8)   # small-B path
    run_case(k2, B=8, Hs=8, Ws=8, Skv=8)   # multi-batch-per-step path
    print("KERNEL_OK")
</pallas_src>

<mosaic_0001>
module attributes {stable_mosaic.version = 11 : i64} {
  func.func @_cross_attn_kernel(%arg0: i32, %arg1: memref<128x32xf32, #tpu.memory_space<vmem>>, %arg2: memref<16x16xbf16, #tpu.memory_space<vmem>>, %arg3: memref<32x32xbf16, #tpu.memory_space<vmem>>, %arg4: memref<1x32xf32, #tpu.memory_space<vmem>>, %arg5: memref<16x64xbf16, #tpu.memory_space<vmem>>, %arg6: memref<1x64xf32, #tpu.memory_space<vmem>>, %arg7: memref<32x32xbf16, #tpu.memory_space<vmem>>, %arg8: memref<1x32xf32, #tpu.memory_space<vmem>>, %arg9: memref<1x32xf32, #tpu.memory_space<vmem>>, %arg10: memref<1x32xf32, #tpu.memory_space<vmem>>, %arg11: memref<64x64xbf16, #tpu.memory_space<vmem>>, %arg12: memref<2x64x32xbf16, #tpu.memory_space<vmem>>, %arg13: memref<128x32xf32, #tpu.memory_space<vmem>>) attributes {dimension_semantics = [#tpu.dimension_semantics<parallel>], iteration_bounds = array<i64: 1>, scalar_prefetch = 0 : i64, scratch_operands = 0 : i64, tpu.core_type = #tpu.core_type<tc>, window_params = [{transform_indices = @transform_0, window_bounds = array<i64: 128, 32>}, {transform_indices = @transform_1, window_bounds = array<i64: 16, 16>}, {pipeline_mode = #tpu.pipeline_mode<synchronous>, transform_indices = @transform_2, window_bounds = array<i64: 32, 32>}, {pipeline_mode = #tpu.pipeline_mode<synchronous>, transform_indices = @transform_3, window_bounds = array<i64: 1, 32>}, {pipeline_mode = #tpu.pipeline_mode<synchronous>, transform_indices = @transform_4, window_bounds = array<i64: 16, 64>}, {pipeline_mode = #tpu.pipeline_mode<synchronous>, transform_indices = @transform_5, window_bounds = array<i64: 1, 64>}, {pipeline_mode = #tpu.pipeline_mode<synchronous>, transform_indices = @transform_6, window_bounds = array<i64: 32, 32>}, {pipeline_mode = #tpu.pipeline_mode<synchronous>, transform_indices = @transform_7, window_bounds = array<i64: 1, 32>}, {pipeline_mode = #tpu.pipeline_mode<synchronous>, transform_indices = @transform_8, window_bounds = array<i64: 1, 32>}, {pipeline_mode = #tpu.pipeline_mode<synchronous>, transform_indices = @transform_9, window_bounds = array<i64: 1, 32>}, {pipeline_mode = #tpu.pipeline_mode<synchronous>, transform_indices = @transform_10, window_bounds = array<i64: 64, 64>}, {pipeline_mode = #tpu.pipeline_mode<synchronous>, transform_indices = @transform_11, window_bounds = array<i64: 2, 64, 32>}, {transform_indices = @transform_12, window_bounds = array<i64: 128, 32>}]} {
    %c0 = arith.constant 0 : index
    %c0_0 = arith.constant 0 : index
    %0 = vector.load %arg1[%c0, %c0_0] : memref<128x32xf32, #tpu.memory_space<vmem>>, vector<128x32xf32>
    %1 = arith.truncf %0 : vector<128x32xf32> to vector<128x32xbf16>
    %c0_1 = arith.constant 0 : index
    %c0_2 = arith.constant 0 : index
    %2 = vector.load %arg3[%c0_1, %c0_2] : memref<32x32xbf16, #tpu.memory_space<vmem>>, vector<32x32xbf16>
    %cst = arith.constant dense<0.000000e+00> : vector<128x32xf32>
    %3 = tpu.matmul %1, %2, %cst {dimension_numbers = #tpu.dot_dimension_numbers<[1], [0], [0], [1], [0, 0, 1, 1], [], []>} : vector<128x32xbf16>, vector<32x32xbf16>, vector<128x32xf32> -> vector<128x32xf32>
    %c0_3 = arith.constant 0 : index
    %c0_4 = arith.constant 0 : index
    %4 = vector.load %arg4[%c0_3, %c0_4] : memref<1x32xf32, #tpu.memory_space<vmem>>, vector<1x32xf32>
    %5 = vector.broadcast %4 : vector<1x32xf32> to vector<128x32xf32>
    %6 = arith.addf %3, %5 : vector<128x32xf32>
    %c0_5 = arith.constant 0 : index
    %c0_6 = arith.constant 0 : index
    %7 = vector.load %arg2[%c0_5, %c0_6] : memref<16x16xbf16, #tpu.memory_space<vmem>>, vector<16x16xbf16>
    %c0_7 = arith.constant 0 : index
    %c0_8 = arith.constant 0 : index
    %8 = vector.load %arg5[%c0_7, %c0_8] : memref<16x64xbf16, #tpu.memory_space<vmem>>, vector<16x64xbf16>
    %cst_9 = arith.constant dense<0.000000e+00> : vector<16x64xf32>
    %9 = tpu.matmul %7, %8, %cst_9 {dimension_numbers = #tpu.dot_dimension_numbers<[1], [0], [0], [1], [0, 0, 1, 1], [], []>} : vector<16x16xbf16>, vector<16x64xbf16>, vector<16x64xf32> -> vector<16x64xf32>
    %c0_10 = arith.constant 0 : index
    %c0_11 = arith.constant 0 : index
    %10 = vector.load %arg6[%c0_10, %c0_11] : memref<1x64xf32, #tpu.memory_space<vmem>>, vector<1x64xf32>
    %11 = vector.broadcast %10 : vector<1x64xf32> to vector<16x64xf32>
    %12 = arith.addf %9, %11 : vector<16x64xf32>
    %13 = arith.truncf %12 : vector<16x64xf32> to vector<16x64xbf16>
    %14 = vector.shape_cast %13 : vector<16x64xbf16> to vector<2x8x64xbf16>
    %15 = tpu.concatenate %14, %14, %14, %14, %14, %14, %14, %14 in 1 : vector<2x8x64xbf16>, vector<2x8x64xbf16>, vector<2x8x64xbf16>, vector<2x8x64xbf16>, vector<2x8x64xbf16>, vector<2x8x64xbf16>, vector<2x8x64xbf16>, vector<2x8x64xbf16> -> vector<2x64x64xbf16>
    %c0_12 = arith.constant 0 : index
    %c0_13 = arith.constant 0 : index
    %16 = vector.load %arg11[%c0_12, %c0_13] : memref<64x64xbf16, #tpu.memory_space<vmem>>, vector<64x64xbf16>
    %17 = vector.shape_cast %16 : vector<64x64xbf16> to vector<1x64x64xbf16>
    %18 = vector.broadcast %17 : vector<1x64x64xbf16> to vector<2x64x64xbf16>
    %19 = arith.mulf %15, %18 : vector<2x64x64xbf16>
    %20 = vector.extract_strided_slice %19 {offsets = [0, 0, 0], sizes = [2, 64, 32], strides = [1, 1, 1]} : vector<2x64x64xbf16> to vector<2x64x32xbf16>
    %21 = vector.extract_strided_slice %19 {offsets = [0, 0, 32], sizes = [2, 64, 32], strides = [1, 1, 1]} : vector<2x64x64xbf16> to vector<2x64x32xbf16>
    %c0_14 = arith.constant 0 : index
    %c0_15 = arith.constant 0 : index
    %c0_16 = arith.constant 0 : index
    %22 = vector.load %arg12[%c0_14, %c0_15, %c0_16] : memref<2x64x32xbf16, #tpu.memory_space<vmem>>, vector<2x64x32xbf16>
    %23 = tpu.concatenate %21, %22 in 2 : vector<2x64x32xbf16>, vector<2x64x32xbf16> -> vector<2x64x64xbf16>
    %24 = arith.truncf %6 : vector<128x32xf32> to vector<128x32xbf16>
    %25 = vector.shape_cast %24 : vector<128x32xbf16> to vector<2x64x32xbf16>
    "tpu.trace_start"() <{level = 10 : i32, message = "bqe,bje->bqj"}> : () -> ()
    %cst_17 = arith.constant dense<0.000000e+00> : vector<2x64x64xf32>
    %26 = tpu.matmul %25, %20, %cst_17 {dimension_numbers = #tpu.dot_dimension_numbers<[2], [2], [1], [1], [0, 0, 0, 1, 1, 1], [0], [0]>} : vector<2x64x32xbf16>, vector<2x64x32xbf16>, vector<2x64x64xf32> -> vector<2x64x64xf32>
    "tpu.trace_stop"() : () -> ()
    %cst_18 = arith.constant dense<0xFF800000> : vector<2x64xf32>
    %27 = vector.multi_reduction <maximumf>, %26, %cst_18 [2] : vector<2x64x64xf32> to vector<2x64xf32>
    %28 = vector.shape_cast %27 : vector<2x64xf32> to vector<2x64x1xf32>
    %29 = vector.broadcast %28 : vector<2x64x1xf32> to vector<2x64x64xf32>
    %30 = arith.subf %26, %29 : vector<2x64x64xf32>
    %31 = math.exp %30 : vector<2x64x64xf32>
    %32 = arith.truncf %31 : vector<2x64x64xf32> to vector<2x64x64xbf16>
    "tpu.trace_start"() <{level = 10 : i32, message = "bqj,bjf->bqf"}> : () -> ()
    %cst_19 = arith.constant dense<0.000000e+00> : vector<2x64x64xf32>
    %33 = tpu.matmul %32, %23, %cst_19 {dimension_numbers = #tpu.dot_dimension_numbers<[2], [1], [1], [2], [0, 0, 0, 1, 1, 2], [0], [0]>} : vector<2x64x64xbf16>, vector<2x64x64xbf16>, vector<2x64x64xf32> -> vector<2x64x64xf32>
    "tpu.trace_stop"() : () -> ()
    %34 = vector.shape_cast %33 : vector<2x64x64xf32> to vector<128x64xf32>
    %35 = vector.extract_strided_slice %34 {offsets = [0, 0], sizes = [128, 32], strides = [1, 1]} : vector<128x64xf32> to vector<128x32xf32>
    %36 = vector.extract_strided_slice %34 {offsets = [0, 32], sizes = [128, 32], strides = [1, 1]} : vector<128x64xf32> to vector<128x32xf32>
    %cst_20 = arith.constant 1.000000e-30 : f32
    %37 = vector.broadcast %cst_20 : f32 to vector<128x32xf32>
    %38 = arith.maximumf %36, %37 : vector<128x32xf32>
    %39 = tpu.reciprocal %38 {approx = true} : vector<128x32xf32> -> vector<128x32xf32>
    %40 = arith.mulf %35, %39 : vector<128x32xf32>
    %41 = arith.truncf %40 : vector<128x32xf32> to vector<128x32xbf16>
    %c0_21 = arith.constant 0 : index
    %c0_22 = arith.constant 0 : index
    %42 = vector.load %arg7[%c0_21, %c0_22] : memref<32x32xbf16, #tpu.memory_space<vmem>>, vector<32x32xbf16>
    %cst_23 = arith.constant dense<0.000000e+00> : vector<128x32xf32>
    %43 = tpu.matmul %41, %42, %cst_23 {dimension_numbers = #tpu.dot_dimension_numbers<[1], [0], [0], [1], [0, 0, 1, 1], [], []>} : vector<128x32xbf16>, vector<32x32xbf16>, vector<128x32xf32> -> vector<128x32xf32>
    %c0_24 = arith.constant 0 : index
    %c0_25 = arith.constant 0 : index
    %44 = vector.load %arg8[%c0_24, %c0_25] : memref<1x32xf32, #tpu.memory_space<vmem>>, vector<1x32xf32>
    %45 = vector.broadcast %44 : vector<1x32xf32> to vector<128x32xf32>
    %46 = arith.addf %43, %45 : vector<128x32xf32>
    %47 = arith.addf %0, %46 : vector<128x32xf32>
    %cst_26 = arith.constant dense<0.000000e+00> : vector<128xf32>
    %48 = vector.multi_reduction <add>, %47, %cst_26 [1] : vector<128x32xf32> to vector<128xf32>
    %49 = vector.shape_cast %48 : vector<128xf32> to vector<128x1xf32>
    %cst_27 = arith.constant 3.200000e+01 : f32
    %50 = vector.broadcast %cst_27 : f32 to vector<128x1xf32>
    %51 = arith.divf %49, %50 : vector<128x1xf32>
    %52 = vector.broadcast %51 : vector<128x1xf32> to vector<128x32xf32>
    %53 = arith.subf %47, %52 : vector<128x32xf32>
    %54 = arith.mulf %53, %53 : vector<128x32xf32>
    %cst_28 = arith.constant dense<0.000000e+00> : vector<128xf32>
    %55 = vector.multi_reduction <add>, %54, %cst_28 [1] : vector<128x32xf32> to vector<128xf32>
    %56 = vector.shape_cast %55 : vector<128xf32> to vector<128x1xf32>
    %cst_29 = arith.constant 3.200000e+01 : f32
    %57 = vector.broadcast %cst_29 : f32 to vector<128x1xf32>
    %58 = arith.divf %56, %57 : vector<128x1xf32>
    %cst_30 = arith.constant 9.99999974E-6 : f32
    %59 = vector.broadcast %cst_30 : f32 to vector<128x1xf32>
    %60 = arith.addf %58, %59 : vector<128x1xf32>
    %61 = math.rsqrt %60 : vector<128x1xf32>
    %62 = vector.broadcast %61 : vector<128x1xf32> to vector<128x32xf32>
    %63 = arith.mulf %53, %62 : vector<128x32xf32>
    %c0_31 = arith.constant 0 : index
    %c0_32 = arith.constant 0 : index
    %64 = vector.load %arg9[%c0_31, %c0_32] : memref<1x32xf32, #tpu.memory_space<vmem>>, vector<1x32xf32>
    %65 = vector.broadcast %64 : vector<1x32xf32> to vector<128x32xf32>
    %66 = arith.mulf %63, %65 : vector<128x32xf32>
    %c0_33 = arith.constant 0 : index
    %c0_34 = arith.constant 0 : index
    %67 = vector.load %arg10[%c0_33, %c0_34] : memref<1x32xf32, #tpu.memory_space<vmem>>, vector<1x32xf32>
    %68 = vector.broadcast %67 : vector<1x32xf32> to vector<128x32xf32>
    %69 = arith.addf %66, %68 : vector<128x32xf32>
    %c0_35 = arith.constant 0 : index
    %c0_36 = arith.constant 0 : index
    %70 = vector.load %arg13[%c0_35, %c0_36] : memref<128x32xf32, #tpu.memory_space<vmem>>, vector<128x32xf32>
    tpu.vector_store %arg13[%c0_35, %c0_36], %69 {strides = array<i32>} : memref<128x32xf32, #tpu.memory_space<vmem>>, vector<128x32xf32>,
    return
  }
  func.func @transform_0(%arg0: i32) -> (i32, i32) {
    %c0_i32 = arith.constant 0 : i32
    %c0_i32_0 = arith.constant 0 : i32
    return %arg0, %c0_i32 : i32, i32
  }
  func.func @transform_1(%arg0: i32) -> (i32, i32) {
    %c0_i32 = arith.constant 0 : i32
    %c0_i32_0 = arith.constant 0 : i32
    return %arg0, %c0_i32 : i32, i32
  }
  func.func @transform_2(%arg0: i32) -> (i32, i32) {
    %c0_i32 = arith.constant 0 : i32
    %c0_i32_0 = arith.constant 0 : i32
    %c0_i32_1 = arith.constant 0 : i32
    return %c0_i32, %c0_i32_0 : i32, i32
  }
  func.func @transform_3(%arg0: i32) -> (i32, i32) {
    %c0_i32 = arith.constant 0 : i32
    %c0_i32_0 = arith.constant 0 : i32
    %c0_i32_1 = arith.constant 0 : i32
    return %c0_i32, %c0_i32_0 : i32, i32
  }
  func.func @transform_4(%arg0: i32) -> (i32, i32) {
    %c0_i32 = arith.constant 0 : i32
    %c0_i32_0 = arith.constant 0 : i32
    %c0_i32_1 = arith.constant 0 : i32
    return %c0_i32, %c0_i32_0 : i32, i32
  }
  func.func @transform_5(%arg0: i32) -> (i32, i32) {
    %c0_i32 = arith.constant 0 : i32
    %c0_i32_0 = arith.constant 0 : i32
    %c0_i32_1 = arith.constant 0 : i32
    return %c0_i32, %c0_i32_0 : i32, i32
  }
  func.func @transform_6(%arg0: i32) -> (i32, i32) {
    %c0_i32 = arith.constant 0 : i32
    %c0_i32_0 = arith.constant 0 : i32
    %c0_i32_1 = arith.constant 0 : i32
    return %c0_i32, %c0_i32_0 : i32, i32
  }
  func.func @transform_7(%arg0: i32) -> (i32, i32) {
    %c0_i32 = arith.constant 0 : i32
    %c0_i32_0 = arith.constant 0 : i32
    %c0_i32_1 = arith.constant 0 : i32
    return %c0_i32, %c0_i32_0 : i32, i32
  }
  func.func @transform_8(%arg0: i32) -> (i32, i32) {
    %c0_i32 = arith.constant 0 : i32
    %c0_i32_0 = arith.constant 0 : i32
    %c0_i32_1 = arith.constant 0 : i32
    return %c0_i32, %c0_i32_0 : i32, i32
  }
  func.func @transform_9(%arg0: i32) -> (i32, i32) {
    %c0_i32 = arith.constant 0 : i32
    %c0_i32_0 = arith.constant 0 : i32
    %c0_i32_1 = arith.constant 0 : i32
    return %c0_i32, %c0_i32_0 : i32, i32
  }
  func.func @transform_10(%arg0: i32) -> (i32, i32) {
    %c0_i32 = arith.constant 0 : i32
    %c0_i32_0 = arith.constant 0 : i32
    %c0_i32_1 = arith.constant 0 : i32
    return %c0_i32, %c0_i32_0 : i32, i32
  }
  func.func @transform_11(%arg0: i32) -> (i32, i32, i32) {
    %c0_i32 = arith.constant 0 : i32
    %c0_i32_0 = arith.constant 0 : i32
    %c0_i32_1 = arith.constant 0 : i32
    %c0_i32_2 = arith.constant 0 : i32
    return %c0_i32, %c0_i32_0, %c0_i32_1 : i32, i32, i32
  }
  func.func @transform_12(%arg0: i32) -> (i32, i32) {
    %c0_i32 = arith.constant 0 : i32
    %c0_i32_0 = arith.constant 0 : i32
    return %arg0, %c0_i32 : i32, i32
  }
}

</mosaic_0001>

<bundles_post_ra>
// kernel: tpu_custom_call.1
= control target key start
LH: loop header
LB: loop body
LE: loop exit
PB: predicated region body
PF: predicated region fallthrough
CT: control target
= control target key end

     0   :  { %v1822_v0 = vmov 0.0   ;;  %vm1823_vm0 = vmmov 0   ;;  %vm233_vm1 = vcmask 130048   ;;  %vm89_vm2 = vcmask 261120   ;;  %s1824_s26 = smov 32   ;;  %s2604_s4 = inlined_call_operand.vmem [shape: bf16[16,64], index: 4, kind: input, shape index: {}]   ;;  %s2605_s1 = inlined_call_operand.vmem [shape: bf16[16,16], index: 1, kind: input, shape index: {}]   ;;  %s2606_s2 = inlined_call_operand.vmem [shape: bf16[32,32], index: 2, kind: input, shape index: {}]   ;;  %s2607_s0 = inlined_call_operand.vmem [shape: f32[128,32], index: 0, kind: input, shape index: {}]   ;;  %s2608_s11 = inlined_call_operand.vmem [shape: bf16[2,64,32], index: 11, kind: input, shape index: {}]   ;;  %s2609_s10 = inlined_call_operand.vmem [shape: bf16[64,64], index: 10, kind: input, shape index: {}]   ;;  %s2610_s5 = inlined_call_operand.vmem [shape: f32[1,64], index: 5, kind: input, shape index: {}]   ;;  %s2611_s3 = inlined_call_operand.vmem [shape: f32[1,32], index: 3, kind: input, shape index: {}]   ;;  %s2612_s6 = inlined_call_operand.vmem [shape: bf16[32,32], index: 6, kind: input, shape index: {}]   ;;  %s2613_s7 = inlined_call_operand.vmem [shape: f32[1,32], index: 7, kind: input, shape index: {}]   ;;  %s2614_s8 = inlined_call_operand.vmem [shape: f32[1,32], index: 8, kind: input, shape index: {}]   ;;  %s2615_s9 = inlined_call_operand.vmem [shape: f32[1,32], index: 9, kind: input, shape index: {}]   ;;  %s2616_s12 = inlined_call_operand.vmem [shape: f32[128,32], index: 12, kind: output, shape index: {}]  }
   0x1   :  { %1593 = vmatprep.subr.bf16.mxu1 %v1822_v0  ;;  %v1695_v1 = vld [vmem:[%s2604_s4] sm:$0xff]   ;;  %1595 = vmatprep.mubr.msk.bf16.mxu1 %vm1823_vm0, %v1822_v0  ;;  %v1697_v3 = vld [vmem:[%s2606_s2 + $0x8] sm:$0xff]   ;;  %v1912_v8 = vld [vmem:[%s2607_s0 + $0x10] sm:$0xff]  ;;  %vm645_vm3 = vcmask 523264  }
   0x2   :  { %v1696_v2 = vld [vmem:[%s2605_s1] sm:$0xff]   ;;  %1594 = vmatpush3.bf16.msra.mxu1 %v1695_v1  ;;  %1573 = vmatprep.subr.bf16.mxu0 %v1697_v3  ;;  %v43_v6 = vld [vmem:[%s2607_s0 + $0x8] sm:$0xff]  ;;  %v45_v9 = vld [vmem:[%s2607_s0 + $0x18] sm:$0xff] }
   0x3   :  { %v1698_v4 = vld [vmem:[%s2606_s2] sm:$0xff]   ;;  %1574 = vmatpush3.bf16.msra.mxu0 %v1697_v3  ;;  %v47_v11 = vld [vmem:[%s2607_s0 + $0x28] sm:$0xff]  ;;  %v59_v12 = vpack.c.bf16 %v45_v9, %v1912_v8  ;;  %v1699_v14 = vld [vmem:[%s2608_s11 + $0x18] sm:$0xff]  }
   0x4   :  { %v42_v5 = vld [vmem:[%s2607_s0] sm:$0xff]  ;;  %1575 = vmatprep.subr.bf16.mxu0 %v1698_v4  ;;  %v48_v15 = vld [vmem:[%s2607_s0 + $0x30] sm:$0xff]  ;;  %v49_v16 = vld [vmem:[%s2607_s0 + $0x38] sm:$0xff]  ;;  %417 = vrot.lane.b32.xlu1 %v1699_v14, %s1824_s26 }
   0x5   :  { %1596 = vmatmul.mubr.msk.bf16.vlgmr.msra.gmra.mxu1 %vm233_vm1, %v1696_v2  ;;  %v58_v7 = vpack.c.bf16 %v43_v6, %v42_v5  ;;  %v46_v10 = vld [vmem:[%s2607_s0 + $0x20] sm:$0xff]  ;;  %v1700_v17 = vld [vmem:[%s2608_s11 + $0x10] sm:$0xff]   ;;  %v51_v19 = vld [vmem:[%s2607_s0 + $0x48] sm:$0xff]  ;;  %v61_v21 = vpack.c.bf16 %v49_v16, %v48_v15 }
   0x6   :  { %v60_v13 = vpack.c.bf16 %v47_v11, %v46_v10  ;;  %v50_v18 = vld [vmem:[%s2607_s0 + $0x40] sm:$0xff]  ;;  %v1701_v20 = vld [vmem:[%s2608_s11 + $0x8] sm:$0xff]   ;;  %v1959_v24 = vld [vmem:[%s2607_s0 + $0x50] sm:$0xff] }
   0x7   :  { %1577 = vmatprep.mubr.msk.bf16.mxu0 %vm89_vm2, %v58_v7  ;;  %1576 = vmatpush3.bf16.msra.mxu0 %v1698_v4  ;;  %v62_v22 = vpack.c.bf16 %v51_v19, %v50_v18  ;;  %v1702_v23 = vld [vmem:[%s2608_s11] sm:$0xff]   ;;  %v1964_v25 = vld [vmem:[%s2607_s0 + $0x58] sm:$0xff]  ;;  %v55_v27 = vld [vmem:[%s2607_s0 + $0x68] sm:$0xff] }
   0x8   :  { %415 = vrot.lane.b32.xlu1 %v1700_v17, %s1824_s26  ;;  %v54_v26 = vld [vmem:[%s2607_s0 + $0x60] sm:$0xff]  ;;  %v63_v28 = vpack.c.bf16 %v1964_v25, %v1959_v24  ;;  %v1703_v29 = vld [vmem:[%s2608_s11 + $0x38] sm:$0xff]   ;;  %v1704_v31 = vld [vmem:[%s2608_s11 + $0x30] sm:$0xff]  }
   0x9   :  { %v64_v30 = vpack.c.bf16 %v55_v27, %v54_v26  ;;  %v56_v32 = vld [vmem:[%s2607_s0 + $0x70] sm:$0xff]  ;;  %v57_v33 = vld [vmem:[%s2607_s0 + $0x78] sm:$0xff]  ;;  %v1705_v35 = vld [vmem:[%s2608_s11 + $0x28] sm:$0xff]  }
   0xa   :  { %1578 = vmatmul.mubr.msk.bf16.vlgmr.msra.gmra.mxu0 %vm89_vm2, %v59_v12  ;;  %v65_v34 = vpack.c.bf16 %v57_v33, %v56_v32  ;;  %v1470_v36 = vld [vmem:[%s2610_s5] ss:$0 sm:$0xff]  ;;  %v1706_v39 = vld [vmem:[%s2609_s10 + $0x18] sm:$0xff]   ;;  %v1707_v40 = vld [vmem:[%s2609_s10 + $0x8] sm:$0xff]   ;;  %s1825_s5 = smov 96  }
   0xb   :  { %1581 = vmatprep.mubr.msk.bf16.mxu0 %vm89_vm2, %v60_v13  ;;  %v1708_v43 = vld [vmem:[%s2609_s10 + $0x10] sm:$0xff]   ;;  %v2016_v54 = vld [vmem:[%s2611_s3] ss:$0 sm:$0xff] }
   0xc   :  { %413 = vrot.lane.b32.xlu1 %v1701_v20, %s1824_s26  ;;  %v1709_v56 = vld [vmem:[%s2609_s10] sm:$0xff]  }
  0x10   :  { %411 = vrot.lane.b32.xlu1 %v1702_v23, %s1824_s26 }
  0x12   :  { %1582 = vmatmul.mubr.msk.bf16.gmra.mxu0 %vm89_vm2, %v61_v21 }
  0x13   :  { %1585 = vmatprep.mubr.msk.bf16.mxu0 %vm89_vm2, %v62_v22 }
  0x14   :  { %425 = vrot.lane.b32.xlu1 %v1703_v29, %s1824_s26 }
  0x18   :  { %423 = vrot.lane.b32.xlu1 %v1704_v31, %s1824_s26 }
  0x1a   :  { %1586 = vmatmul.mubr.msk.bf16.gmra.mxu0 %vm89_vm2, %v63_v28 }
  0x1b   :  { %1589 = vmatprep.mubr.msk.bf16.mxu0 %vm89_vm2, %v64_v30 }
  0x1c   :  { %421 = vrot.lane.b32.xlu1 %v1705_v35, %s1824_s26 }
  0x22   :  { %1590 = vmatmul.mubr.msk.bf16.gmra.mxu0 %vm89_vm2, %v65_v34 }
  0xc5   :  { %v271_v37 = vpop.f32.mrf.mxu1 }
  0xc6   :  { %v272_v38 = vadd.f32 %v1470_v36, %v271_v37 }
  0xc7   :  { %v1597_v41 = vpop.f32.mrf.mxu1 }
  0xc8   :  { %v1517_v42 = vpack.c.bf16 %v272_v38, %v272_v38 }
  0xc9   :  { %v274_v44 = vpop.f32.mrf.mxu1 }
  0xca   :  { %v275_v45 = vadd.f32 %v1470_v36, %v274_v44  ;;  %v326_v46 = vmul.bf16 %v1706_v39, %v1517_v42  ;;  %v324_v47 = vmul.bf16 %v1707_v40, %v1517_v42  ;;  %v325_v51 = vmul.bf16 %v1708_v43, %v1517_v42  ;;  %v1579_v52 = vpop.f32.mrf.mxu0 }
  0xcb   :  { %v1598_v48 = vpop.f32.mrf.mxu1  ;;  %v323_v61 = vmul.bf16 %v1709_v56, %v1517_v42  ;;  %v157_v21 = vadd.f32 %v1579_v52, %v2016_v54 }
  0xcc   :  { %v1518_v49 = vpack.c.bf16 %v275_v45, %v275_v45  ;;  %361 = vrot.lane.b32.xlu0 %v326_v46, %s1825_s5  ;;  %1683 = vmatprep.subr.msk.bf16.mxu1 %vm89_vm2, %v326_v46  ;;  %v489_v50 = vsel %vm89_vm2, %v326_v46, 0  ;;  %v148_v55 = vpop.f32.mrf.mxu0  ;;  %v486_v0 = vsel %vm89_vm2, %v325_v51, 0  ;;  %v483_v9 = vsel %vm89_vm2, %v324_v47, 0  ;;  %v418_v45 = vpop.permute.xlu1 %417 }
  0xcd   :  { %357 = vrot.lane.b32.xlu1 %v324_v47, %s1825_s5  ;;  %1600 = vmatpush3.bf16.xpose.msra.mxu1 %v489_v50  ;;  %v149_v60 = vadd.f32 %v2016_v54, %v148_v55  ;;  %v480_v18 = vsel %vm89_vm2, %v323_v61, 0 }
  0xce   :  { %1684 = vmatprep.subr.msk.bf16.mxu1 %vm89_vm2, %v325_v51  ;;  %v330_v53 = vmul.bf16 %v1706_v39, %v1518_v49  ;;  %v329_v58 = vmul.bf16 %v1708_v43, %v1518_v49  ;;  %v1580_v59 = vpop.f32.mrf.mxu0  ;;  %v328_v5 = vmul.bf16 %v1707_v40, %v1518_v49  ;;  %v2039_v13 = vmul.bf16 %v1709_v56, %v1518_v49 }
  0xcf   :  { %v160_v22 = vadd.f32 %v1580_v59, %v2016_v54 }
  0xd0   :  { %359 = vrot.lane.b32.xlu0 %v325_v51, %s1825_s5  ;;  %1687 = vmatprep.subr.msk.bf16.mxu0 %vm89_vm2, %v330_v53  ;;  %v578_v57 = vsel %vm89_vm2, %v330_v53, 0  ;;  %v151_v62 = vpop.f32.mrf.mxu0  ;;  %v575_v4 = vsel %vm89_vm2, %v329_v58, 0  ;;  %v572_v12 = vsel %vm89_vm2, %v328_v5, 0  ;;  %v569_v28 = vsel %vm89_vm2, %v2039_v13, 0  ;;  %v416_v46 = vpop.permute.xlu1 %415 }
  0xd1   :  { %369 = vrot.lane.b32.xlu1 %v330_v53, %s1825_s5  ;;  %1616 = vmatpush3.bf16.xpose.msra.mxu0 %v578_v57  ;;  %v152_v63 = vadd.f32 %v2016_v54, %v151_v62  ;;  %v460_v31 = vpack.c.bf16 %v160_v22, %v157_v21 }
  0xd2   :  { %1688 = vmatprep.subr.msk.bf16.mxu0 %vm89_vm2, %v329_v58  ;;  %v1583_v1 = vpop.f32.mrf.mxu0 }
  0xd3   :  { %v459_v2 = vpack.c.bf16 %v152_v63, %v149_v60  ;;  %v173_v38 = vadd.f32 %v1583_v1, %v2016_v54 }
  0xd4   :  { %355 = vrot.lane.b32.xlu0 %v323_v61, %s1825_s5  ;;  %v164_v3 = vpop.f32.mrf.mxu0 }
  0xd5   :  { %1602 = vmatpush3.bf16.xpose.msra.mxu1 %v486_v0  ;;  %1607 = vmatprep.mubr.msk.bf16.mxu1 %vm89_vm2, %v459_v2  ;;  %v165_v26 = vadd.f32 %v2016_v54, %v164_v3 }
  0xd6   :  { %1685 = vmatprep.subr.msk.bf16.mxu1 %vm89_vm2, %v324_v47  ;;  %v1584_v6 = vpop.f32.mrf.mxu0  ;;  %v414_v47 = vpop.permute.xlu1 %413 }
  0xd7   :  { %v176_v39 = vadd.f32 %v1584_v6, %v2016_v54 }
  0xd8   :  { %367 = vrot.lane.b32.xlu0 %v329_v58, %s1825_s5  ;;  %v167_v7 = vpop.f32.mrf.mxu0 }
  0xd9   :  { %1618 = vmatpush3.bf16.xpose.msra.mxu0 %v575_v4  ;;  %v168_v27 = vadd.f32 %v2016_v54, %v167_v7  ;;  %v462_v43 = vpack.c.bf16 %v176_v39, %v173_v38 }
  0xda   :  { %1689 = vmatprep.subr.msk.bf16.mxu0 %vm89_vm2, %v328_v5  ;;  %v1587_v10 = vpop.f32.mrf.mxu0  ;;  %v412_v48 = vpop.permute.xlu1 %411 }
  0xdb   :  { %v189_v32 = vadd.f32 %v1587_v10, %v2016_v54  ;;  %v461_v35 = vpack.c.bf16 %v168_v27, %v165_v26 }
  0xdc   :  { %365 = vrot.lane.b32.xlu0 %v328_v5, %s1825_s5  ;;  %v180_v11 = vpop.f32.mrf.mxu0 }
  0xdd   :  { %1604 = vmatpush3.bf16.xpose.msra.mxu1 %v483_v9  ;;  %v181_v15 = vadd.f32 %v2016_v54, %v180_v11 }
  0xde   :  { %1686 = vmatprep.subr.msk.bf16.mxu1 %vm89_vm2, %v323_v61  ;;  %v1588_v14 = vpop.f32.mrf.mxu0  ;;  %v426_v49 = vpop.permute.xlu1 %425 }
  0xdf   :  { %v192_v33 = vadd.f32 %v1588_v14, %v2016_v54 }
  0xe0   :  { %v183_v16 = vpop.f32.mrf.mxu0 }
  0xe1   :  { %1620 = vmatpush3.bf16.xpose.msra.mxu0 %v572_v12  ;;  %v184_v17 = vadd.f32 %v2016_v54, %v183_v16  ;;  %v464_v40 = vpack.c.bf16 %v192_v33, %v189_v32 }
  0xe2   :  { %1690 = vmatprep.subr.msk.bf16.mxu0 %vm89_vm2, %v2039_v13  ;;  %v1591_v19 = vpop.f32.mrf.mxu0  ;;  %v2067_v50 = vpop.permute.xlu1 %423 }
  0xe3   :  { %v463_v20 = vpack.c.bf16 %v184_v17, %v181_v15  ;;  %v205_v41 = vadd.f32 %v1591_v19, %v2016_v54 }
  0xe4   :  { %v196_v23 = vpop.f32.mrf.mxu0 }
  0xe5   :  { %1606 = vmatpush3.bf16.xpose.msra.mxu1 %v480_v18  ;;  %1623 = vmatprep.mubr.msk.bf16.mxu0 %vm89_vm2, %v463_v20  ;;  %v197_v30 = vadd.f32 %v2016_v54, %v196_v23 }
  0xe6   :  { %v1592_v29 = vpop.f32.mrf.mxu0  ;;  %v2069_v51 = vpop.permute.xlu1 %421 }
  0xe7   :  { %v208_v42 = vadd.f32 %v1592_v29, %v2016_v54 }
  0xe8   :  { %v199_v34 = vpop.f32.mrf.mxu0 }
  0xe9   :  { %1622 = vmatpush3.bf16.xpose.msra.mxu0 %v569_v28  ;;  %v200_v36 = vadd.f32 %v2016_v54, %v199_v34  ;;  %v466_v44 = vpack.c.bf16 %v208_v42, %v205_v41  ;;  %v1710_v34 = vld [vmem:[%s2608_s11 + $0x20] sm:$0xff]  }
  0xeb   :  { %v465_v37 = vpack.c.bf16 %v200_v36, %v197_v30 }
  0xec   :  { %1608 = vmatmul.mubr.msk.bf16.vlgmr.msra.gmra.mxu1 %vm89_vm2, %v460_v31 }
  0xed   :  { %1611 = vmatprep.mubr.msk.bf16.mxu1 %vm89_vm2, %v461_v35 }
  0xf0   :  { %1624 = vmatmul.mubr.msk.bf16.vlgmr.msra.gmra.mxu0 %vm89_vm2, %v464_v40 }
  0xf1   :  { %1627 = vmatprep.mubr.msk.bf16.mxu0 %vm89_vm2, %v465_v37 }
  0xf4   :  { %1612 = vmatmul.mubr.msk.bf16.gmra.mxu1 %vm89_vm2, %v462_v43 }
  0xf8   :  { %1628 = vmatmul.mubr.msk.bf16.gmra.mxu0 %vm89_vm2, %v466_v44 }
 0x13e   :  { %v362_v52 = vpop.permute.xlu0 %361 }
 0x13f   :  { %v441_v53 = vsel %vm89_vm2, %v362_v52, %v418_v45  ;;  %v358_v54 = vpop.permute.xlu1 %357 }
 0x140   :  { %1631 = vmatprep.subr.bf16.mxu0 %v441_v53  ;;  %v433_v57 = vsel %vm89_vm2, %v358_v54, %v414_v47 }
 0x141   :  { %1632 = vmatpush3.bf16.msra.mxu0 %v441_v53 }
 0x142   :  { %v360_v55 = vpop.permute.xlu0 %359 }
 0x143   :  { %v437_v56 = vsel %vm89_vm2, %v360_v55, %v416_v46  ;;  %v370_v60 = vpop.permute.xlu1 %369 }
 0x144   :  { %1633 = vmatprep.subr.bf16.mxu0 %v437_v56  ;;  %v2076_v61 = vsel %vm89_vm2, %v370_v60, %v426_v49 }
 0x145   :  { %1634 = vmatpush3.bf16.msra.mxu0 %v437_v56 }
 0x146   :  { %v356_v58 = vpop.permute.xlu0 %355  ;;  %1635 = vmatprep.subr.bf16.mxu0 %v433_v57 }
 0x147   :  { %v429_v59 = vsel %vm89_vm2, %v356_v58, %v412_v48 }
 0x149   :  { %1636 = vmatpush3.bf16.msra.mxu0 %v433_v57 }
 0x14a   :  { %1637 = vmatprep.subr.bf16.mxu0 %v429_v59  ;;  %v2134_v35 = vpop.permute.xlu0 %367 }
 0x14d   :  { %1638 = vmatpush3.bf16.msra.mxu0 %v429_v59 }
 0x14e   :  { %1647 = vmatprep.subr.bf16.mxu0 %v2076_v61  ;;  %v2136_v36 = vpop.permute.xlu0 %365 }
 0x1ac   :  { %v2079_v62 = vpop.f32.mrf.mxu1 }
 0x1ad   :  { %v652_v63 = vsel %vm645_vm3, %v2079_v62, -inf }
 0x1ae   :  { %653 = vmax.xlane.f32.xlu1 %v652_v63  ;;  %v525_v0 = vpop.f32.mrf.mxu1 }
 0x1af   :  { %v646_v1 = vsel %vm645_vm3, %v525_v0, -inf }
 0x1b0   :  { %v2084_v2 = vpop.f32.mrf.mxu0  ;;  %647 = vmax.xlane.f32.xlu0 %v646_v1  ;;  %v1610_v3 = vpop.f32.mrf.mxu1 }
 0x1b1   :  { %v655_v4 = vsel %vm645_vm3, %v1610_v3, -inf  ;;  %v676_v7 = vsel %vm645_vm3, %v2084_v2, -inf }
 0x1b2   :  { %v2087_v5 = vpop.f32.mrf.mxu0  ;;  %656 = vmax.xlane.f32.xlu1 %v655_v4  ;;  %v528_v6 = vpop.f32.mrf.mxu1 }
 0x1b3   :  { %v670_v11 = vsel %vm645_vm3, %v2087_v5, -inf  ;;  %v649_v15 = vsel %vm645_vm3, %v528_v6, -inf }
 0x1b4   :  { %v2091_v9 = vpop.f32.mrf.mxu0  ;;  %677 = vmax.xlane.f32.xlu0 %v676_v7  ;;  %v2093_v10 = vpop.f32.mrf.mxu1 }
 0x1b5   :  { %v679_v17 = vsel %vm645_vm3, %v2091_v9, -inf  ;;  %v664_v20 = vsel %vm645_vm3, %v2093_v10, -inf }
 0x1b6   :  { %v2097_v12 = vpop.f32.mrf.mxu0  ;;  %671 = vmax.xlane.f32.xlu1 %v670_v11  ;;  %v2099_v14 = vpop.f32.mrf.mxu1 }
 0x1b7   :  { %v658_v26 = vsel %vm645_vm3, %v2099_v14, -inf  ;;  %v673_v29 = vsel %vm645_vm3, %v2097_v12, -inf }
 0x1b8   :  { %650 = vmax.xlane.f32.xlu0 %v649_v15  ;;  %v2102_v16 = vpop.f32.mrf.mxu0  ;;  %v1614_v18 = vpop.f32.mrf.mxu1 }
 0x1b9   :  { %v667_v21 = vsel %vm645_vm3, %v1614_v18, -inf  ;;  %v688_v31 = vsel %vm645_vm3, %v2102_v16, -inf }
 0x1ba   :  { %680 = vmax.xlane.f32.xlu1 %v679_v17  ;;  %v2106_v19 = vpop.f32.mrf.mxu0  ;;  %v544_v22 = vpop.f32.mrf.mxu1 }
 0x1bb   :  { %v661_v27 = vsel %vm645_vm3, %v544_v22, -inf  ;;  %v682_v32 = vsel %vm645_vm3, %v2106_v19, -inf }
 0x1bc   :  { %665 = vmax.xlane.f32.xlu0 %v664_v20  ;;  %v2111_v23 = vpop.f32.mrf.mxu0 }
 0x1bd   :  { %v691_v33 = vsel %vm645_vm3, %v2111_v23, -inf }
 0x1be   :  { %668 = vmax.xlane.f32.xlu1 %v667_v21  ;;  %v2116_v28 = vpop.f32.mrf.mxu0 }
 0x1bf   :  { %v685_v30 = vsel %vm645_vm3, %v2116_v28, -inf }
 0x1c0   :  { %659 = vmax.xlane.f32.xlu0 %v658_v26 }
 0x1c2   :  { %662 = vmax.xlane.f32.xlu1 %v661_v27 }
 0x1c4   :  { %674 = vmax.xlane.f32.xlu0 %v673_v29 }
 0x1c6   :  { %686 = vmax.xlane.f32.xlu1 %v685_v30 }
 0x1c8   :  { %689 = vmax.xlane.f32.xlu0 %v688_v31 }
 0x1cc   :  { %683 = vmax.xlane.f32.xlu0 %v682_v32 }
 0x1d0   :  { %692 = vmax.xlane.f32.xlu0 %v691_v33 }
 0x1d7   :  { %419 = vrot.lane.b32.xlu1 %v1710_v34, %s1824_s26 }
 0x1e6   :  { %363 = vrot.lane.b32.xlu0 %v2039_v13, %s1825_s5 }
 0x237   :  { %v654_v37 = vpop.xlane.xlu1 %653 }
 0x238   :  { %v696_v43 = vsub.f32 %v2079_v62, %v654_v37 }
 0x239   :  { %v648_v38 = vpop.xlane.xlu0 %647 }
 0x23a   :  { %v694_v40 = vsub.f32 %v525_v0, %v648_v38  ;;  %v714_v49 = vmul.f32 1.442695, %v696_v43 }
 0x23b   :  { %v657_v39 = vpop.xlane.xlu1 %656 }
 0x23c   :  { %v697_v41 = vsub.f32 %v1610_v3, %v657_v39  ;;  %v710_v45 = vmul.f32 1.442695, %v694_v40 }
 0x23d   :  { %v678_v42 = vpop.xlane.xlu0 %677 }
 0x23e   :  { %v716_v46 = vmul.f32 1.442695, %v697_v41  ;;  %1713 = vpow2.f32 %v710_v45 }
 0x23f   :  { %v672_v44 = vpop.xlane.xlu1 %671 }
 0x240   :  { %1715 = vpow2.f32 %v716_v46  ;;  %v702_v53 = vsub.f32 %v2087_v5, %v672_v44 }
 0x241   :  { %v651_v47 = vpop.xlane.xlu0 %650 }
 0x242   :  { %v695_v48 = vsub.f32 %v528_v6, %v651_v47  ;;  %v726_v57 = vmul.f32 1.442695, %v702_v53 }
 0x243   :  { %v681_v52 = vpop.xlane.xlu1 %680 }
 0x244   :  { %v712_v13 = vmul.f32 1.442695, %v695_v48  ;;  %v705_v7 = vsub.f32 %v2091_v9, %v681_v52 }
 0x245   :  { %v666_v54 = vpop.xlane.xlu0 %665 }
 0x246   :  { %1717 = vpow2.f32 %v712_v13  ;;  %v700_v58 = vsub.f32 %v2093_v10, %v666_v54  ;;  %v704_v10 = vsub.f32 %v2084_v2, %v678_v42  ;;  %v1711_v54 = vld [vmem:[%s2612_s6 + $0x8] sm:$0xff]  }
 0x247   :  { %1719 = vpow2.f32 %v714_v49  ;;  %v669_v55 = vpop.xlane.xlu1 %668  ;;  %1663 = vmatprep.subr.bf16.mxu1 %v1711_v54 }
 0x248   :  { %v701_v56 = vsub.f32 %v1614_v18, %v669_v55  ;;  %1721 = vpow2.f32 %v726_v57  ;;  %v722_v3 = vmul.f32 1.442695, %v700_v58  ;;  %v730_v27 = vmul.f32 1.442695, %v704_v10  ;;  %1664 = vmatpush3.bf16.msra.mxu1 %v1711_v54 }
 0x249   :  { %v660_v59 = vpop.xlane.xlu0 %659 }
 0x24a   :  { %v724_v60 = vmul.f32 1.442695, %v701_v56  ;;  %v698_v62 = vsub.f32 %v2099_v14, %v660_v59 }
 0x24b   :  { %v663_v63 = vpop.xlane.xlu1 %662  ;;  %v1714_v17 = vpop.eup %1713 }
 0x24c   :  { %v718_v0 = vmul.f32 1.442695, %v698_v62  ;;  %v699_v1 = vsub.f32 %v544_v22, %v663_v63  ;;  %1723 = vpow2.f32 %v724_v60  ;;  %v732_v22 = vmul.f32 1.442695, %v705_v7  ;;  %v1712_v62 = vld [vmem:[%s2612_s6] sm:$0xff]  }
 0x24d   :  { %v675_v4 = vpop.xlane.xlu0 %674  ;;  %v1716_v20 = vpop.eup %1715  ;;  %1665 = vmatprep.subr.bf16.mxu1 %v1712_v62 }
 0x24e   :  { %v720_v5 = vmul.f32 1.442695, %v699_v1  ;;  %v703_v6 = vsub.f32 %v2097_v12, %v675_v4  ;;  %1725 = vpow2.f32 %v718_v0  ;;  %1666 = vmatpush3.bf16.msra.mxu1 %v1712_v62 }
 0x24f   :  { %v687_v11 = vpop.xlane.xlu1 %686 }
 0x250   :  { %1727 = vpow2.f32 %v720_v5  ;;  %v728_v15 = vmul.f32 1.442695, %v703_v6  ;;  %v707_v14 = vsub.f32 %v2116_v28, %v687_v11  ;;  %v453_v28 = vsel %vm89_vm2, %v2134_v35, %v2067_v50 }
 0x251   :  { %1729 = vpow2.f32 %v722_v3  ;;  %v690_v18 = vpop.xlane.xlu0 %689 }
 0x252   :  { %1731 = vpow2.f32 %v728_v15  ;;  %v736_v9 = vmul.f32 1.442695, %v707_v14  ;;  %v708_v32 = vsub.f32 %v2102_v16, %v690_v18 }
 0x253   :  { %v1718_v21 = vpop.eup %1717  ;;  %1733 = vpow2.f32 %v732_v22  ;;  %v420_v38 = vpop.permute.xlu1 %419 }
 0x254   :  { %v1720_v26 = vpop.eup %1719  ;;  %v742_v12 = vpack.c.bf16 %v1718_v21, %v1714_v17  ;;  %1735 = vpow2.f32 %v730_v27  ;;  %v738_v50 = vmul.f32 1.442695, %v708_v32 }
 0x255   :  { %v743_v29 = vpack.c.bf16 %v1716_v20, %v1720_v26  ;;  %v684_v30 = vpop.xlane.xlu0 %683  ;;  %1737 = vpow2.f32 %v736_v9  ;;  %v1722_v34 = vpop.eup %1721 }
 0x256   :  { %v706_v31 = vsub.f32 %v2106_v19, %v684_v30  ;;  %1639 = vmatprep.mubr.msk.bf16.mxu0 %vm645_vm3, %v742_v12 }
 0x257   :  { %1640 = vmatmul.mubr.msk.bf16.vlgmr.msra.gmra.mxu0 %vm645_vm3, %v743_v29 }
 0x258   :  { %v734_v2 = vmul.f32 1.442695, %v706_v31  ;;  %1648 = vmatpush3.bf16.msra.mxu0 %v2076_v61  ;;  %v449_v61 = vsel %vm89_vm2, %v2136_v36, %v2069_v51 }
 0x259   :  { %1649 = vmatprep.subr.bf16.mxu0 %v453_v28  ;;  %v693_v33 = vpop.xlane.xlu0 %692  ;;  %v1724_v37 = vpop.eup %1723 }
 0x25a   :  { %1739 = vpow2.f32 %v734_v2  ;;  %v709_v19 = vsub.f32 %v2111_v23, %v693_v33 }
 0x25b   :  { %v1726_v39 = vpop.eup %1725 }
 0x25c   :  { %v740_v40 = vmul.f32 1.442695, %v709_v19  ;;  %1650 = vmatpush3.bf16.msra.mxu0 %v453_v28 }
 0x25d   :  { %v1728_v41 = vpop.eup %1727  ;;  %1651 = vmatprep.subr.bf16.mxu0 %v449_v61  ;;  %v364_v35 = vpop.permute.xlu0 %363 }
 0x25e   :  { %v1730_v16 = vpop.eup %1729  ;;  %v744_v42 = vpack.c.bf16 %v1728_v41, %v1726_v39  ;;  %v445_v43 = vsel %vm89_vm2, %v364_v35, %v420_v38  ;;  %1741 = vpow2.f32 %v740_v40 }
 0x25f   :  { %v1732_v44 = vpop.eup %1731  ;;  %v745_v23 = vpack.c.bf16 %v1724_v37, %v1730_v16  ;;  %1743 = vpow2.f32 %v738_v50 }
 0x260   :  { %1652 = vmatpush3.bf16.msra.mxu0 %v449_v61  ;;  %1643 = vmatprep.mubr.msk.bf16.mxu0 %vm645_vm3, %v744_v42  ;;  %v746_v45 = vpack.c.bf16 %v1732_v44, %v1722_v34  ;;  %v1734_v51 = vpop.eup %1733 }
 0x261   :  { %1653 = vmatprep.subr.bf16.mxu0 %v445_v43  ;;  %1644 = vmatmul.mubr.msk.bf16.gmra.mxu0 %vm645_vm3, %v745_v23  ;;  %v1736_v36 = vpop.eup %1735 }
 0x262   :  { %1655 = vmatprep.mubr.msk.bf16.mxu0 %vm645_vm3, %v746_v45  ;;  %v1738_v46 = vpop.eup %1737  ;;  %v747_v48 = vpack.c.bf16 %v1734_v51, %v1736_v36 }
 0x264   :  { %1654 = vmatpush3.bf16.msra.mxu0 %v445_v43 }
 0x267   :  { %v1740_v47 = vpop.eup %1739 }
 0x268   :  { %v748_v49 = vpack.c.bf16 %v1738_v46, %v1740_v47 }
 0x269   :  { %1656 = vmatmul.mubr.msk.bf16.vlgmr.msra.gmra.mxu0 %vm645_vm3, %v747_v48 }
 0x26a   :  { %1659 = vmatprep.mubr.msk.bf16.mxu0 %vm645_vm3, %v748_v49 }
 0x26b   :  { %v1742_v52 = vpop.eup %1741 }
 0x26c   :  { %v1744_v13 = vpop.eup %1743 }
 0x26d   :  { %v749_v53 = vpack.c.bf16 %v1742_v52, %v1744_v13 }
 0x271   :  { %1660 = vmatmul.mubr.msk.bf16.gmra.mxu0 %vm645_vm3, %v749_v53 }
 0x317   :  { %v2168_v55 = vpop.f32.mrf.mxu0 }
 0x318   :  { %v906_v58 = vmax.f32 %v2168_v55, 1e-30 }
 0x319   :  { %v2170_v56 = vpop.f32.mrf.mxu0 }
 0x31a   :  { %v904_v57 = vmax.f32 %v2170_v56, 1e-30 }
 0x31b   :  { %v2174_v59 = vpop.f32.mrf.mxu0 }
 0x31c   :  { %1745 = vrcp.f32 %v904_v57  ;;  %v907_v0 = vmax.f32 %v2174_v59, 1e-30 }
 0x31d   :  { %v2176_v60 = vpop.f32.mrf.mxu0  ;;  %1747 = vrcp.f32 %v906_v58 }
 0x31e   :  { %v905_v63 = vmax.f32 %v2176_v60, 1e-30 }
 0x320   :  { %1749 = vrcp.f32 %v905_v63 }
 0x321   :  { %v2183_v1 = vpop.f32.mrf.mxu0  ;;  %1751 = vrcp.f32 %v907_v0 }
 0x322   :  { %v910_v5 = vmax.f32 %v2183_v1, 1e-30 }
 0x323   :  { %v2185_v3 = vpop.f32.mrf.mxu0 }
 0x324   :  { %v908_v4 = vmax.f32 %v2185_v3, 1e-30 }
 0x325   :  { %v2189_v6 = vpop.f32.mrf.mxu0 }
 0x326   :  { %1753 = vrcp.f32 %v908_v4  ;;  %v911_v15 = vmax.f32 %v2189_v6, 1e-30 }
 0x327   :  { %v2191_v7 = vpop.f32.mrf.mxu0  ;;  %1755 = vrcp.f32 %v910_v5 }
 0x328   :  { %v909_v11 = vmax.f32 %v2191_v7, 1e-30 }
 0x329   :  { %v1746_v10 = vpop.eup %1745  ;;  %v2195_v17 = vpop.f32.mrf.mxu0 }
 0x32a   :  { %1757 = vrcp.f32 %v909_v11  ;;  %952 = vrot.lane.b32.xlu0 %v1746_v10, %s1825_s5  ;;  %v1748_v18 = vpop.eup %1747  ;;  %v914_v22 = vmax.f32 %v2195_v17, 1e-30 }
 0x32b   :  { %v2198_v14 = vpop.f32.mrf.mxu0  ;;  %1759 = vrcp.f32 %v911_v15 }
 0x32c   :  { %v912_v20 = vmax.f32 %v2198_v14, 1e-30 }
 0x32d   :  { %v1750_v21 = vpop.eup %1749  ;;  %v2202_v26 = vpop.f32.mrf.mxu0 }
 0x32e   :  { %1761 = vrcp.f32 %v912_v20  ;;  %956 = vrot.lane.b32.xlu0 %v1748_v18, %s1825_s5  ;;  %954 = vrot.lane.b32.xlu1 %v1750_v21, %s1825_s5  ;;  %v1752_v29 = vpop.eup %1751  ;;  %v915_v9 = vmax.f32 %v2202_v26, 1e-30 }
 0x32f   :  { %v2206_v27 = vpop.f32.mrf.mxu0  ;;  %1763 = vrcp.f32 %v914_v22 }
 0x330   :  { %v913_v12 = vmax.f32 %v2206_v27, 1e-30 }
 0x331   :  { %v2210_v30 = vpop.f32.mrf.mxu0 }
 0x332   :  { %1765 = vrcp.f32 %v913_v12  ;;  %958 = vrot.lane.b32.xlu1 %v1752_v29, %s1825_s5  ;;  %v918_v32 = vmax.f32 %v2210_v30, 1e-30 }
 0x333   :  { %v1754_v31 = vpop.eup %1753  ;;  %v2213_v2 = vpop.f32.mrf.mxu0  ;;  %1767 = vrcp.f32 %v915_v9 }
 0x334   :  { %v916_v28 = vmax.f32 %v2213_v2, 1e-30  ;;  %960 = vrot.lane.b32.xlu0 %v1754_v31, %s1825_s5  ;;  %v1756_v34 = vpop.eup %1755 }
 0x335   :  { %v2218_v33 = vpop.f32.mrf.mxu0 }
 0x336   :  { %1769 = vrcp.f32 %v916_v28  ;;  %v919_v40 = vmax.f32 %v2218_v33, 1e-30 }
 0x337   :  { %v1758_v19 = vpop.eup %1757  ;;  %v2220_v37 = vpop.f32.mrf.mxu0  ;;  %1771 = vrcp.f32 %v918_v32 }
 0x338   :  { %v917_v38 = vmax.f32 %v2220_v37, 1e-30  ;;  %964 = vrot.lane.b32.xlu0 %v1756_v34, %s1825_s5  ;;  %962 = vrot.lane.b32.xlu1 %v1758_v19, %s1825_s5  ;;  %v1760_v39 = vpop.eup %1759 }
 0x33a   :  { %1773 = vrcp.f32 %v917_v38 }
 0x33b   :  { %v1762_v61 = vpop.eup %1761  ;;  %1775 = vrcp.f32 %v919_v40 }
 0x33c   :  { %966 = vrot.lane.b32.xlu1 %v1760_v39, %s1825_s5  ;;  %968 = vrot.lane.b32.xlu0 %v1762_v61, %s1825_s5  ;;  %v1764_v41 = vpop.eup %1763  ;;  %v1810_v61 = vld [vmem:[%s2607_s0 + $0x8] sm:$0xff] }
 0x33f   :  { %v1766_v50 = vpop.eup %1765 }
 0x340   :  { %972 = vrot.lane.b32.xlu0 %v1764_v41, %s1825_s5  ;;  %970 = vrot.lane.b32.xlu1 %v1766_v50, %s1825_s5  ;;  %v1768_v35 = vpop.eup %1767  ;;  %v1811_v50 = vld [vmem:[%s2607_s0 + $0x18] sm:$0xff] }
 0x343   :  { %v1770_v16 = vpop.eup %1769 }
 0x344   :  { %974 = vrot.lane.b32.xlu1 %v1768_v35, %s1825_s5  ;;  %976 = vrot.lane.b32.xlu0 %v1770_v16, %s1825_s5  ;;  %v1772_v42 = vpop.eup %1771 }
 0x347   :  { %v1774_v43 = vpop.eup %1773 }
 0x348   :  { %980 = vrot.lane.b32.xlu0 %v1772_v42, %s1825_s5  ;;  %978 = vrot.lane.b32.xlu1 %v1774_v43, %s1825_s5  ;;  %v1776_v44 = vpop.eup %1775 }
 0x34c   :  { %982 = vrot.lane.b32.xlu1 %v1776_v44, %s1825_s5 }
 0x39c   :  { %v953_v23 = vpop.permute.xlu0 %952 }
 0x39d   :  { %v1000_v51 = vmul.f32 %v953_v23, %v2170_v56 }
 0x3a0   :  { %v955_v45 = vpop.permute.xlu1 %954  ;;  %v957_v46 = vpop.permute.xlu0 %956 }
 0x3a1   :  { %v1001_v36 = vmul.f32 %v955_v45, %v2176_v60  ;;  %v1002_v49 = vmul.f32 %v2168_v55, %v957_v46 }
 0x3a3   :  { %v1016_v47 = vpack.c.bf16 %v1001_v36, %v1000_v51  ;;  %v1812_v51 = vld [vmem:[%s2607_s0 + $0x30] sm:$0xff] }
 0x3a4   :  { %v959_v48 = vpop.permute.xlu1 %958 }
 0x3a5   :  { %v1003_v52 = vmul.f32 %v2174_v59, %v959_v48  ;;  %1667 = vmatprep.mubr.msk.bf16.mxu1 %vm89_vm2, %v1016_v47 }
 0x3a6   :  { %v961_v13 = vpop.permute.xlu0 %960 }
 0x3a7   :  { %v1017_v53 = vpack.c.bf16 %v1003_v52, %v1002_v49  ;;  %v1004_v58 = vmul.f32 %v961_v13, %v2185_v3  ;;  %v1813_v13 = vld [vmem:[%s2607_s0 + $0x38] sm:$0xff] }
 0x3a9   :  { %1668 = vmatmul.mubr.msk.bf16.vlgmr.msra.gmra.mxu1 %vm89_vm2, %v1017_v53 }
 0x3aa   :  { %v965_v54 = vpop.permute.xlu0 %964  ;;  %v963_v57 = vpop.permute.xlu1 %962 }
 0x3ab   :  { %v1005_v56 = vmul.f32 %v963_v57, %v2191_v7  ;;  %v1006_v0 = vmul.f32 %v2183_v1, %v965_v54  ;;  %v1814_v54 = vld [vmem:[%s2607_s0 + $0x20] sm:$0xff] }
 0x3ad   :  { %v1018_v60 = vpack.c.bf16 %v1005_v56, %v1004_v58 }
 0x3ae   :  { %v969_v62 = vpop.permute.xlu0 %968  ;;  %v967_v63 = vpop.permute.xlu1 %966 }
 0x3af   :  { %v1007_v55 = vmul.f32 %v2189_v6, %v967_v63  ;;  %1671 = vmatprep.mubr.msk.bf16.mxu1 %vm89_vm2, %v1018_v60  ;;  %v1008_v11 = vmul.f32 %v969_v62, %v2198_v14  ;;  %v1815_v62 = vld [vmem:[%s2607_s0 + $0x28] sm:$0xff] }
 0x3b1   :  { %v1019_v59 = vpack.c.bf16 %v1007_v55, %v1006_v0 }
 0x3b2   :  { %v973_v4 = vpop.permute.xlu0 %972  ;;  %v971_v5 = vpop.permute.xlu1 %970 }
 0x3b3   :  { %v1009_v10 = vmul.f32 %v971_v5, %v2206_v27  ;;  %1672 = vmatmul.mubr.msk.bf16.gmra.mxu1 %vm89_vm2, %v1019_v59  ;;  %v1010_v18 = vmul.f32 %v2195_v17, %v973_v4 }
 0x3b5   :  { %v1020_v3 = vpack.c.bf16 %v1009_v10, %v1008_v11 }
 0x3b6   :  { %v977_v7 = vpop.permute.xlu0 %976  ;;  %v975_v15 = vpop.permute.xlu1 %974 }
 0x3b7   :  { %v1011_v1 = vmul.f32 %v2202_v26, %v975_v15  ;;  %1675 = vmatprep.mubr.msk.bf16.mxu1 %vm89_vm2, %v1020_v3  ;;  %v1012_v21 = vmul.f32 %v977_v7, %v2213_v2  ;;  %v2262_v26 = vld [vmem:[%s2613_s7] ss:$0 sm:$0xff] }
 0x3b9   :  { %v1021_v6 = vpack.c.bf16 %v1011_v1, %v1010_v18 }
 0x3ba   :  { %v979_v20 = vpop.permute.xlu1 %978  ;;  %v981_v14 = vpop.permute.xlu0 %980 }
 0x3bb   :  { %v1013_v22 = vmul.f32 %v979_v20, %v2220_v37  ;;  %1676 = vmatmul.mubr.msk.bf16.gmra.mxu1 %vm89_vm2, %v1021_v6  ;;  %v1014_v29 = vmul.f32 %v2210_v30, %v981_v14  ;;  %v1809_v37 = vld [vmem:[%s2607_s0] sm:$0xff] }
 0x3bd   :  { %v1022_v27 = vpack.c.bf16 %v1013_v22, %v1012_v21  ;;  %v1817_v21 = vld [vmem:[%s2607_s0 + $0x48] sm:$0xff] }
 0x3be   :  { %v983_v12 = vpop.permute.xlu1 %982 }
 0x3bf   :  { %v1015_v9 = vmul.f32 %v2218_v33, %v983_v12  ;;  %1679 = vmatprep.mubr.msk.bf16.mxu1 %vm89_vm2, %v1022_v27 }
 0x3c1   :  { %v1023_v17 = vpack.c.bf16 %v1015_v9, %v1014_v29 }
 0x3c3   :  { %1680 = vmatmul.mubr.msk.bf16.gmra.mxu1 %vm89_vm2, %v1023_v17  ;;  %v1818_v17 = vld [vmem:[%s2607_s0 + $0x60] sm:$0xff] }
 0x469   :  { %v1669_v31 = vpop.f32.mrf.mxu1 }
 0x46a   :  { %v1114_v2 = vadd.f32 %v1669_v31, %v2262_v26 }
 0x46b   :  { %v1105_v28 = vpop.f32.mrf.mxu1 }
 0x46c   :  { %v1106_v32 = vadd.f32 %v2262_v26, %v1105_v28  ;;  %v2267_v30 = vadd.f32 %v1114_v2, %v1912_v8 }
 0x46d   :  { %v1670_v33 = vpop.f32.mrf.mxu1 }
 0x46e   :  { %v1117_v34 = vadd.f32 %v1670_v33, %v2262_v26  ;;  %v1190_v19 = vsel %vm89_vm2, %v2267_v30, 0.0  ;;  %v2275_v38 = vadd.f32 %v1809_v37, %v1106_v32  ;;  %v1820_v37 = vld [vmem:[%s2607_s0 + $0x68] sm:$0xff] }
 0x46f   :  { %1191 = vadd.xlane.f32.xlu0 %v1190_v19  ;;  %v1108_v39 = vpop.f32.mrf.mxu1 }
 0x470   :  { %v1109_v40 = vadd.f32 %v2262_v26, %v1108_v39  ;;  %v1184_v8 = vsel %vm89_vm2, %v2275_v38, 0.0  ;;  %v2288_v35 = vadd.f32 %v1811_v50, %v1117_v34  ;;  %v1819_v34 = vld [vmem:[%s2607_s0 + $0x70] sm:$0xff] }
 0x472   :  { %v2283_v41 = vadd.f32 %v1810_v61, %v1109_v40  ;;  %v1193_v45 = vsel %vm89_vm2, %v2288_v35, 0.0 }
 0x473   :  { %1185 = vadd.xlane.f32.xlu0 %v1184_v8  ;;  %v1673_v16 = vpop.f32.mrf.mxu1  ;;  %v1821_v8 = vld [vmem:[%s2607_s0 + $0x78] sm:$0xff] }
 0x474   :  { %v1130_v42 = vadd.f32 %v1673_v16, %v2262_v26  ;;  %v1187_v43 = vsel %vm89_vm2, %v2283_v41, 0.0 }
 0x475   :  { %1188 = vadd.xlane.f32.xlu1 %v1187_v43  ;;  %v1121_v44 = vpop.f32.mrf.mxu1 }
 0x476   :  { %v1122_v23 = vadd.f32 %v2262_v26, %v1121_v44  ;;  %v2299_v36 = vadd.f32 %v1812_v51, %v1130_v42 }
 0x477   :  { %1194 = vadd.xlane.f32.xlu0 %v1193_v45  ;;  %v1674_v46 = vpop.f32.mrf.mxu1 }
 0x478   :  { %v1133_v47 = vadd.f32 %v1674_v46, %v2262_v26  ;;  %v1202_v52 = vsel %vm89_vm2, %v2299_v36, 0.0  ;;  %v2313_v57 = vadd.f32 %v1814_v54, %v1122_v23 }
 0x479   :  { %v1124_v48 = vpop.f32.mrf.mxu1 }
 0x47a   :  { %v1125_v49 = vadd.f32 %v2262_v26, %v1124_v48  ;;  %v2308_v53 = vadd.f32 %v1813_v13, %v1133_v47  ;;  %v1196_v59 = vsel %vm89_vm2, %v2313_v57, 0.0 }
 0x47b   :  { %1203 = vadd.xlane.f32.xlu0 %v1202_v52  ;;  %v1677_v58 = vpop.f32.mrf.mxu1 }
 0x47c   :  { %v1146_v56 = vadd.f32 %v1677_v58, %v2262_v26  ;;  %v1205_v60 = vsel %vm89_vm2, %v2308_v53, 0.0  ;;  %v2321_v63 = vadd.f32 %v1815_v62, %v1125_v49 }
 0x47d   :  { %1206 = vadd.xlane.f32.xlu1 %v1205_v60  ;;  %v1137_v0 = vpop.f32.mrf.mxu1 }
 0x47e   :  { %v1138_v55 = vadd.f32 %v2262_v26, %v1137_v0  ;;  %v2327_v4 = vadd.f32 %v1146_v56, %v1959_v24  ;;  %v1199_v10 = vsel %vm89_vm2, %v2321_v63, 0.0  ;;  %v1816_v24 = vld [vmem:[%s2607_s0 + $0x40] sm:$0xff] }
 0x47f   :  { %1197 = vadd.xlane.f32.xlu0 %v1196_v59  ;;  %v1678_v5 = vpop.f32.mrf.mxu1 }
 0x480   :  { %v1149_v11 = vadd.f32 %v1678_v5, %v2262_v26  ;;  %v1214_v15 = vsel %vm89_vm2, %v2327_v4, 0.0  ;;  %v2341_v1 = vadd.f32 %v1816_v24, %v1138_v55 }
 0x481   :  { %1200 = vadd.xlane.f32.xlu1 %v1199_v10  ;;  %v1140_v3 = vpop.f32.mrf.mxu1 }
 0x482   :  { %v1141_v7 = vadd.f32 %v2262_v26, %v1140_v3  ;;  %v2336_v18 = vadd.f32 %v1149_v11, %v1964_v25  ;;  %v1208_v12 = vsel %vm89_vm2, %v2341_v1, 0.0 }
 0x483   :  { %1215 = vadd.xlane.f32.xlu0 %v1214_v15  ;;  %v1681_v6 = vpop.f32.mrf.mxu1 }
 0x484   :  { %v1217_v20 = vsel %vm89_vm2, %v2336_v18, 0.0  ;;  %v2348_v22 = vadd.f32 %v1817_v21, %v1141_v7  ;;  %v1162_v14 = vadd.f32 %v1681_v6, %v2262_v26 }
 0x485   :  { %1218 = vadd.xlane.f32.xlu1 %v1217_v20  ;;  %v1153_v25 = vpop.f32.mrf.mxu1 }
 0x486   :  { %v1154_v27 = vadd.f32 %v2262_v26, %v1153_v25  ;;  %v1211_v9 = vsel %vm89_vm2, %v2348_v22, 0.0  ;;  %v2368_v19 = vadd.f32 %v1819_v34, %v1162_v14 }
 0x487   :  { %1209 = vadd.xlane.f32.xlu0 %v1208_v12  ;;  %v1682_v29 = vpop.f32.mrf.mxu1 }
 0x488   :  { %v2359_v31 = vadd.f32 %v1818_v17, %v1154_v27  ;;  %v1165_v28 = vadd.f32 %v1682_v29, %v2262_v26 }
 0x489   :  { %1212 = vadd.xlane.f32.xlu1 %v1211_v9  ;;  %v1156_v2 = vpop.f32.mrf.mxu1 }
 0x48a   :  { %v1157_v32 = vadd.f32 %v2262_v26, %v1156_v2  ;;  %v1220_v33 = vsel %vm89_vm2, %v2359_v31, 0.0  ;;  %v1226_v26 = vsel %vm89_vm2, %v2368_v19, 0.0  ;;  %v2382_v61 = vadd.f32 %v1821_v8, %v1165_v28 }
 0x48b   :  { %1221 = vadd.xlane.f32.xlu0 %v1220_v33 }
 0x48c   :  { %v2373_v39 = vadd.f32 %v1820_v37, %v1157_v32  ;;  %v1229_v50 = vsel %vm89_vm2, %v2382_v61, 0.0 }
 0x48e   :  { %v1223_v40 = vsel %vm89_vm2, %v2373_v39, 0.0 }
 0x48f   :  { %1224 = vadd.xlane.f32.xlu1 %v1223_v40  ;;  %1227 = vadd.xlane.f32.xlu0 %v1226_v26 }
 0x493   :  { %1230 = vadd.xlane.f32.xlu1 %v1229_v50 }
 0x4f8   :  { %v1192_v16 = vpop.xlane.xlu0 %1191 }
 0x4f9   :  { %v1235_v42 = vmul.f32 0.03125, %v1192_v16 }
 0x4fb   :  { %v2387_v43 = vsub.f32 %v2267_v30, %v1235_v42 }
 0x4fc   :  { %v1186_v44 = vpop.xlane.xlu0 %1185 }
 0x4fd   :  { %v1233_v23 = vmul.f32 0.03125, %v1186_v44  ;;  %v1267_v45 = vmul.f32 %v2387_v43, %v2387_v43 }
 0x4fe   :  { %v1189_v51 = vpop.xlane.xlu1 %1188 }
 0x4ff   :  { %v2392_v46 = vsub.f32 %v2275_v38, %v1233_v23  ;;  %v1234_v47 = vmul.f32 0.03125, %v1189_v51  ;;  %v1287_v48 = vsel %vm89_vm2, %v1267_v45, 0.0 }
 0x500   :  { %v1195_v49 = vpop.xlane.xlu0 %1194  ;;  %1288 = vadd.xlane.f32.xlu0 %v1287_v48 }
 0x501   :  { %v1236_v52 = vmul.f32 0.03125, %v1195_v49  ;;  %v1265_v13 = vmul.f32 %v2392_v46, %v2392_v46  ;;  %v2398_v30 = vsub.f32 %v2283_v41, %v1234_v47 }
 0x503   :  { %v2401_v54 = vsub.f32 %v2288_v35, %v1236_v52  ;;  %v1281_v58 = vsel %vm89_vm2, %v1265_v13, 0.0  ;;  %v1266_v0 = vmul.f32 %v2398_v30, %v2398_v30 }
 0x504   :  { %v1204_v56 = vpop.xlane.xlu0 %1203  ;;  %1282 = vadd.xlane.f32.xlu0 %v1281_v58 }
 0x505   :  { %v1239_v38 = vmul.f32 0.03125, %v1204_v56  ;;  %v1268_v60 = vmul.f32 %v2401_v54, %v2401_v54  ;;  %v1284_v7 = vsel %vm89_vm2, %v1266_v0, 0.0 }
 0x506   :  { %v1207_v62 = vpop.xlane.xlu1 %1206 }
 0x507   :  { %v2409_v55 = vsub.f32 %v2299_v36, %v1239_v38  ;;  %v1240_v41 = vmul.f32 0.03125, %v1207_v62  ;;  %v1290_v59 = vsel %vm89_vm2, %v1268_v60, 0.0 }
 0x508   :  { %v1198_v35 = vpop.xlane.xlu0 %1197  ;;  %1291 = vadd.xlane.f32.xlu1 %v1290_v59 }
 0x509   :  { %v2413_v5 = vsub.f32 %v2308_v53, %v1240_v41  ;;  %v1237_v11 = vmul.f32 0.03125, %v1198_v35  ;;  %v1271_v10 = vmul.f32 %v2409_v55, %v2409_v55 }
 0x50a   :  { %v1201_v3 = vpop.xlane.xlu1 %1200 }
 0x50b   :  { %v2419_v15 = vsub.f32 %v2313_v57, %v1237_v11  ;;  %v1238_v36 = vmul.f32 0.03125, %v1201_v3  ;;  %v1299_v24 = vsel %vm89_vm2, %v1271_v10, 0.0  ;;  %v1272_v6 = vmul.f32 %v2413_v5, %v2413_v5 }
 0x50c   :  { %v1216_v20 = vpop.xlane.xlu0 %1215  ;;  %1300 = vadd.xlane.f32.xlu0 %v1299_v24  ;;  %1285 = vadd.xlane.f32.xlu1 %v1284_v7 }
 0x50d   :  { %v2425_v53 = vsub.f32 %v2321_v63, %v1238_v36  ;;  %v1243_v21 = vmul.f32 0.03125, %v1216_v20  ;;  %v1269_v25 = vmul.f32 %v2419_v15, %v2419_v15  ;;  %v1302_v57 = vsel %vm89_vm2, %v1272_v6, 0.0 }
 0x50e   :  { %v1219_v14 = vpop.xlane.xlu1 %1218 }
 0x50f   :  { %v2431_v27 = vsub.f32 %v2327_v4, %v1243_v21  ;;  %v1244_v12 = vmul.f32 0.03125, %v1219_v14  ;;  %v1293_v29 = vsel %vm89_vm2, %v1269_v25, 0.0  ;;  %v1270_v9 = vmul.f32 %v2425_v53, %v2425_v53 }
 0x510   :  { %v1210_v17 = vpop.xlane.xlu0 %1209  ;;  %1294 = vadd.xlane.f32.xlu0 %v1293_v29  ;;  %1303 = vadd.xlane.f32.xlu1 %v1302_v57 }
 0x511   :  { %v2437_v63 = vsub.f32 %v2336_v18, %v1244_v12  ;;  %v1241_v2 = vmul.f32 0.03125, %v1210_v17  ;;  %v1275_v28 = vmul.f32 %v2431_v27, %v2431_v27  ;;  %v1296_v4 = vsel %vm89_vm2, %v1270_v9, 0.0 }
 0x512   :  { %v1213_v32 = vpop.xlane.xlu1 %1212 }
 0x513   :  { %v2443_v33 = vsub.f32 %v2341_v1, %v1241_v2  ;;  %v1242_v34 = vmul.f32 0.03125, %v1213_v32  ;;  %v1311_v37 = vsel %vm89_vm2, %v1275_v28, 0.0  ;;  %v1276_v40 = vmul.f32 %v2437_v63, %v2437_v63  ;;  %v2485_v2 = vld [vmem:[%s2614_s8] ss:$0 sm:$0xff] }
 0x514   :  { %1312 = vadd.xlane.f32.xlu0 %v1311_v37  ;;  %v1222_v26 = vpop.xlane.xlu0 %1221  ;;  %1297 = vadd.xlane.f32.xlu1 %v1296_v4 }
 0x515   :  { %v2449_v18 = vsub.f32 %v2348_v22, %v1242_v34  ;;  %v1245_v8 = vmul.f32 0.03125, %v1222_v26  ;;  %v1273_v50 = vmul.f32 %v2443_v33, %v2443_v33  ;;  %v1314_v42 = vsel %vm89_vm2, %v1276_v40, 0.0  ;;  %v2491_v34 = vld [vmem:[%s2615_s9] ss:$0 sm:$0xff] }
 0x517   :  { %v2454_v16 = vsub.f32 %v2359_v31, %v1245_v8  ;;  %v1305_v1 = vsel %vm89_vm2, %v1273_v50, 0.0  ;;  %v1274_v44 = vmul.f32 %v2449_v18, %v2449_v18 }
 0x518   :  { %1306 = vadd.xlane.f32.xlu0 %v1305_v1  ;;  %v1228_v23 = vpop.xlane.xlu0 %1227  ;;  %1315 = vadd.xlane.f32.xlu1 %v1314_v42  ;;  %v1225_v45 = vpop.xlane.xlu1 %1224 }
 0x519   :  { %v1247_v22 = vmul.f32 0.03125, %v1228_v23  ;;  %v1246_v51 = vmul.f32 0.03125, %v1225_v45  ;;  %v1277_v47 = vmul.f32 %v2454_v16, %v2454_v16  ;;  %v1308_v52 = vsel %vm89_vm2, %v1274_v44, 0.0 }
 0x51b   :  { %v2463_v48 = vsub.f32 %v2368_v19, %v1247_v22  ;;  %v2466_v31 = vsub.f32 %v2373_v39, %v1246_v51  ;;  %v1317_v49 = vsel %vm89_vm2, %v1277_v47, 0.0 }
 0x51c   :  { %1318 = vadd.xlane.f32.xlu0 %v1317_v49  ;;  %1309 = vadd.xlane.f32.xlu1 %v1308_v52  ;;  %v1231_v13 = vpop.xlane.xlu1 %1230 }
 0x51d   :  { %v1248_v58 = vmul.f32 0.03125, %v1231_v13  ;;  %v1279_v56 = vmul.f32 %v2463_v48, %v2463_v48  ;;  %v1278_v38 = vmul.f32 %v2466_v31, %v2466_v31 }
 0x51f   :  { %v2475_v19 = vsub.f32 %v2382_v61, %v1248_v58  ;;  %v1323_v39 = vsel %vm89_vm2, %v1279_v56, 0.0  ;;  %v1320_v60 = vsel %vm89_vm2, %v1278_v38, 0.0 }
 0x520   :  { %1324 = vadd.xlane.f32.xlu0 %v1323_v39  ;;  %1321 = vadd.xlane.f32.xlu1 %v1320_v60 }
 0x521   :  { %v1280_v62 = vmul.f32 %v2475_v19, %v2475_v19 }
 0x523   :  { %v1326_v0 = vsel %vm89_vm2, %v1280_v62, 0.0 }
 0x524   :  { %1327 = vadd.xlane.f32.xlu1 %v1326_v0 }
 0x589   :  { %v1289_v41 = vpop.xlane.xlu0 %1288 }
 0x58a   :  { %v1331_v59 = vmul.f32 0.03125, %v1289_v41 }
 0x58c   :  { %v1347_v35 = vadd.f32 1e-05, %v1331_v59 }
 0x58d   :  { %v1283_v11 = vpop.xlane.xlu0 %1282 }
 0x58e   :  { %1777 = vrsqrt.f32 %v1347_v35  ;;  %v1329_v10 = vmul.f32 0.03125, %v1283_v11 }
 0x590   :  { %v1345_v61 = vadd.f32 1e-05, %v1329_v10 }
 0x591   :  { %v1292_v3 = vpop.xlane.xlu1 %1291 }
 0x592   :  { %1779 = vrsqrt.f32 %v1345_v61  ;;  %v1332_v7 = vmul.f32 0.03125, %v1292_v3 }
 0x594   :  { %v1348_v36 = vadd.f32 1e-05, %v1332_v7 }
 0x595   :  { %v1301_v24 = vpop.xlane.xlu0 %1300  ;;  %v1286_v6 = vpop.xlane.xlu1 %1285 }
 0x596   :  { %1781 = vrsqrt.f32 %v1348_v36  ;;  %v1335_v20 = vmul.f32 0.03125, %v1301_v24  ;;  %v1330_v21 = vmul.f32 0.03125, %v1286_v6 }
 0x598   :  { %v1351_v25 = vadd.f32 1e-05, %v1335_v20  ;;  %v1346_v14 = vadd.f32 1e-05, %v1330_v21 }
 0x599   :  { %v1295_v57 = vpop.xlane.xlu0 %1294  ;;  %v1304_v12 = vpop.xlane.xlu1 %1303 }
 0x59a   :  { %1783 = vrsqrt.f32 %v1351_v25  ;;  %v1333_v29 = vmul.f32 0.03125, %v1295_v57  ;;  %v1336_v9 = vmul.f32 0.03125, %v1304_v12 }
 0x59b   :  { %v1778_v17 = vpop.eup %1777  ;;  %1785 = vrsqrt.f32 %v1346_v14 }
 0x59c   :  { %v1379_v28 = vmul.f32 %v1778_v17, %v2387_v43  ;;  %v1349_v32 = vadd.f32 1e-05, %v1333_v29  ;;  %v1352_v4 = vadd.f32 1e-05, %v1336_v9 }
 0x59d   :  { %v1313_v37 = vpop.xlane.xlu0 %1312  ;;  %v1298_v40 = vpop.xlane.xlu1 %1297 }
 0x59e   :  { %v1402_v26 = vmul.f32 %v2485_v2, %v1379_v28  ;;  %1787 = vrsqrt.f32 %v1349_v32  ;;  %v1339_v8 = vmul.f32 0.03125, %v1313_v37  ;;  %v1334_v50 = vmul.f32 0.03125, %v1298_v40 }
 0x59f   :  { %v1780_v1 = vpop.eup %1779  ;;  %1789 = vrsqrt.f32 %v1352_v4 }
 0x5a0   :  { %v1425_v42 = vadd.f32 %v2491_v34, %v1402_v26  ;;  %v1377_v43 = vmul.f32 %v1780_v1, %v2392_v46  ;;  %v1355_v44 = vadd.f32 1e-05, %v1339_v8  ;;  %v1350_v23 = vadd.f32 1e-05, %v1334_v50 }
 0x5a1   :  { %v1307_v45 = vpop.xlane.xlu0 %1306  ;;  %v1316_v22 = vpop.xlane.xlu1 %1315 }
 0x5a2   :  { %1441 = vst.msk [vmem:[%s2616_s12 + $0x10] sm:$0xff] %vm89_vm2, %v1425_v42  ;;  %v1400_v51 = vmul.f32 %v2485_v2, %v1377_v43  ;;  %1791 = vrsqrt.f32 %v1355_v44  ;;  %v1337_v47 = vmul.f32 0.03125, %v1307_v45  ;;  %v1340_v49 = vmul.f32 0.03125, %v1316_v22 }
 0x5a3   :  { %v1782_v52 = vpop.eup %1781  ;;  %1793 = vrsqrt.f32 %v1350_v23 }
 0x5a4   :  { %v1423_v13 = vadd.f32 %v2491_v34, %v1400_v51  ;;  %v1380_v46 = vmul.f32 %v1782_v52, %v2401_v54  ;;  %v1353_v58 = vadd.f32 1e-05, %v1337_v47  ;;  %v1356_v56 = vadd.f32 1e-05, %v1340_v49 }
 0x5a5   :  { %v1319_v38 = vpop.xlane.xlu0 %1318  ;;  %v1310_v39 = vpop.xlane.xlu1 %1309 }
 0x5a6   :  { %1439 = vst.msk [vmem:[%s2616_s12] sm:$0xff] %vm89_vm2, %v1423_v13  ;;  %v1403_v60 = vmul.f32 %v2485_v2, %v1380_v46  ;;  %1795 = vrsqrt.f32 %v1353_v58  ;;  %v1341_v62 = vmul.f32 0.03125, %v1319_v38  ;;  %v1338_v0 = vmul.f32 0.03125, %v1310_v39 }
 0x5a7   :  { %v1784_v41 = vpop.eup %1783  ;;  %1797 = vrsqrt.f32 %v1356_v56 }
 0x5a8   :  { %v1786_v59 = vpop.eup %1785  ;;  %v1426_v35 = vadd.f32 %v2491_v34, %v1403_v60  ;;  %v1383_v54 = vmul.f32 %v1784_v41, %v2409_v55  ;;  %v1357_v11 = vadd.f32 1e-05, %v1341_v62  ;;  %v1354_v10 = vadd.f32 1e-05, %v1338_v0 }
 0x5a9   :  { %v1378_v61 = vmul.f32 %v1786_v59, %v2398_v30  ;;  %v1325_v3 = vpop.xlane.xlu0 %1324  ;;  %v1322_v7 = vpop.xlane.xlu1 %1321 }
 0x5aa   :  { %1442 = vst.msk [vmem:[%s2616_s12 + $0x18] sm:$0xff] %vm89_vm2, %v1426_v35  ;;  %v1406_v36 = vmul.f32 %v2485_v2, %v1383_v54  ;;  %1799 = vrsqrt.f32 %v1357_v11  ;;  %v1343_v24 = vmul.f32 0.03125, %v1325_v3  ;;  %v1342_v6 = vmul.f32 0.03125, %v1322_v7 }
 0x5ab   :  { %v1788_v20 = vpop.eup %1787  ;;  %v1401_v21 = vmul.f32 %v2485_v2, %v1378_v61  ;;  %1801 = vrsqrt.f32 %v1354_v10 }
 0x5ac   :  { %v1790_v55 = vpop.eup %1789  ;;  %v1429_v25 = vadd.f32 %v2491_v34, %v1406_v36  ;;  %v1381_v30 = vmul.f32 %v1788_v20, %v2419_v15  ;;  %v1359_v14 = vadd.f32 1e-05, %v1343_v24  ;;  %v1358_v57 = vadd.f32 1e-05, %v1342_v6 }
 0x5ad   :  { %v1424_v12 = vadd.f32 %v2491_v34, %v1401_v21  ;;  %v1384_v29 = vmul.f32 %v1790_v55, %v2413_v5  ;;  %v1328_v9 = vpop.xlane.xlu1 %1327 }
 0x5ae   :  { %1445 = vst.msk [vmem:[%s2616_s12 + $0x30] sm:$0xff] %vm89_vm2, %v1429_v25  ;;  %v1404_v17 = vmul.f32 %v2485_v2, %v1381_v30  ;;  %1803 = vrsqrt.f32 %v1359_v14  ;;  %v1344_v28 = vmul.f32 0.03125, %v1328_v9 }
 0x5af   :  { %v1792_v32 = vpop.eup %1791  ;;  %1440 = vst.msk [vmem:[%s2616_s12 + $0x8] sm:$0xff] %vm89_vm2, %v1424_v12  ;;  %v1407_v15 = vmul.f32 %v2485_v2, %v1384_v29  ;;  %1805 = vrsqrt.f32 %v1358_v57 }
 0x5b0   :  { %v1794_v5 = vpop.eup %1793  ;;  %v1427_v4 = vadd.f32 %v2491_v34, %v1404_v17  ;;  %v1387_v37 = vmul.f32 %v1792_v32, %v2431_v27  ;;  %v1360_v40 = vadd.f32 1e-05, %v1344_v28 }
 0x5b1   :  { %v1430_v26 = vadd.f32 %v2491_v34, %v1407_v15  ;;  %v1382_v8 = vmul.f32 %v1794_v5, %v2425_v53 }
 0x5b2   :  { %1443 = vst.msk [vmem:[%s2616_s12 + $0x20] sm:$0xff] %vm89_vm2, %v1427_v4  ;;  %v1410_v50 = vmul.f32 %v2485_v2, %v1387_v37  ;;  %1807 = vrsqrt.f32 %v1360_v40 }
 0x5b3   :  { %v1796_v1 = vpop.eup %1795  ;;  %1446 = vst.msk [vmem:[%s2616_s12 + $0x38] sm:$0xff] %vm89_vm2, %v1430_v26  ;;  %v1405_v27 = vmul.f32 %v2485_v2, %v1382_v8 }
 0x5b4   :  { %v1798_v42 = vpop.eup %1797  ;;  %v1433_v43 = vadd.f32 %v2491_v34, %v1410_v50  ;;  %v1385_v53 = vmul.f32 %v1796_v1, %v2443_v33 }
 0x5b5   :  { %v1428_v44 = vadd.f32 %v2491_v34, %v1405_v27  ;;  %v1388_v23 = vmul.f32 %v1798_v42, %v2437_v63 }
 0x5b6   :  { %1449 = vst.msk [vmem:[%s2616_s12 + $0x50] sm:$0xff] %vm89_vm2, %v1433_v43  ;;  %v1408_v45 = vmul.f32 %v2485_v2, %v1385_v53 }
 0x5b7   :  { %v1800_v22 = vpop.eup %1799  ;;  %1444 = vst.msk [vmem:[%s2616_s12 + $0x28] sm:$0xff] %vm89_vm2, %v1428_v44  ;;  %v1411_v51 = vmul.f32 %v2485_v2, %v1388_v23 }
 0x5b8   :  { %v1802_v33 = vpop.eup %1801  ;;  %v1431_v47 = vadd.f32 %v2491_v34, %v1408_v45  ;;  %v1389_v63 = vmul.f32 %v1800_v22, %v2454_v16 }
 0x5b9   :  { %v1434_v49 = vadd.f32 %v2491_v34, %v1411_v51  ;;  %v1386_v52 = vmul.f32 %v1802_v33, %v2449_v18 }
 0x5ba   :  { %1447 = vst.msk [vmem:[%s2616_s12 + $0x40] sm:$0xff] %vm89_vm2, %v1431_v47  ;;  %v1412_v13 = vmul.f32 %v2485_v2, %v1389_v63 }
 0x5bb   :  { %v1804_v46 = vpop.eup %1803  ;;  %1450 = vst.msk [vmem:[%s2616_s12 + $0x58] sm:$0xff] %vm89_vm2, %v1434_v49  ;;  %v1409_v58 = vmul.f32 %v2485_v2, %v1386_v52 }
 0x5bc   :  { %v1806_v16 = vpop.eup %1805  ;;  %v1435_v56 = vadd.f32 %v2491_v34, %v1412_v13  ;;  %v1391_v18 = vmul.f32 %v1804_v46, %v2463_v48 }
 0x5bd   :  { %v1432_v38 = vadd.f32 %v2491_v34, %v1409_v58  ;;  %v1390_v39 = vmul.f32 %v1806_v16, %v2466_v31 }
 0x5be   :  { %1451 = vst.msk [vmem:[%s2616_s12 + $0x60] sm:$0xff] %vm89_vm2, %v1435_v56  ;;  %v1414_v60 = vmul.f32 %v2485_v2, %v1391_v18 }
 0x5bf   :  { %v1808_v62 = vpop.eup %1807  ;;  %1448 = vst.msk [vmem:[%s2616_s12 + $0x48] sm:$0xff] %vm89_vm2, %v1432_v38  ;;  %v1413_v0 = vmul.f32 %v2485_v2, %v1390_v39 }
 0x5c0   :  { %v1437_v48 = vadd.f32 %v2491_v34, %v1414_v60  ;;  %v1392_v41 = vmul.f32 %v1808_v62, %v2475_v19 }
 0x5c1   :  { %v1436_v31 = vadd.f32 %v2491_v34, %v1413_v0 }
 0x5c2   :  { %1453 = vst.msk [vmem:[%s2616_s12 + $0x70] sm:$0xff] %vm89_vm2, %v1437_v48  ;;  %v1415_v59 = vmul.f32 %v2485_v2, %v1392_v41 }
 0x5c3   :  { %1452 = vst.msk [vmem:[%s2616_s12 + $0x68] sm:$0xff] %vm89_vm2, %v1436_v31 }
 0x5c4   :  { %v1438_v35 = vadd.f32 %v2491_v34, %v1415_v59 }
 0x5c6   :  { %1454 = vst.msk [vmem:[%s2616_s12 + $0x78] sm:$0xff] %vm89_vm2, %v1438_v35 }

</bundles_post_ra>
